<compile_context>
chip_gen: v6e
topology: v6e:2x2x1
jax: 0.10.0
libtpu: 0.0.40
codegen_flags: <defaults>
</compile_context>

<pallas_src>
import functools

import jax
import jax.numpy as jnp
from jax import lax
from jax.experimental import pallas as pl
from jax.experimental.pallas import tpu as pltpu


# ----------------------------------------------------------------------------
# Pallas kernel: one batch element per grid step.
# ----------------------------------------------------------------------------
def _sepconv_kernel(x_ref,        # (1, H, W, C)   input block (NHWC)
                    w_ref,        # (K*K, C)       depthwise taps, tap-major
                    s_ref,        # (1, C)         folded BN scale
                    b_ref,        # (1, C)         folded BN bias
                    out_ref,      # (1, Ho, Wo, C) output block (NHWC)
                    xpad_scr,     # VMEM (H + 2*pad, LPAD + W + pad, C)
                    *, K, pad, dil, lpad, apply_relu):
    H = x_ref.shape[1]
    W = x_ref.shape[2]
    C = x_ref.shape[3]
    Ho = out_ref.shape[1]
    Wo = out_ref.shape[2]
    WP = xpad_scr.shape[1]

    # --- zero only the halo border strips (interior is fully overwritten) ---
    if pad > 0:
        xpad_scr[0:pad, :, :] = jnp.zeros((pad, WP, C), jnp.float32)
        xpad_scr[pad + H:, :, :] = jnp.zeros((pad, WP, C), jnp.float32)
        xpad_scr[pad:pad + H, lpad - pad:lpad, :] = jnp.zeros((H, pad, C), jnp.float32)
        xpad_scr[pad:pad + H, lpad + W:lpad + W + pad, :] = jnp.zeros((H, pad, C), jnp.float32)

    # --- stage the input at a sublane-aligned column offset -----------------
    xpad_scr[pad:pad + H, lpad:lpad + W, :] = x_ref[0]

    # --- depthwise KxK conv as K*K shifted multiply-accumulates (VPU) -------
    # scratch row r      <-> padded-input row r
    # scratch col lpad-p <-> padded-input col 0
    wv = w_ref[...]                                           # (K*K, C)
    acc = jnp.zeros((Ho, Wo, C), jnp.float32)
    for dy in range(K):
        r0 = dy * dil
        for dx in range(K):
            c0 = lpad - pad + dx * dil
            idx = dy * K + dx
            patch = xpad_scr[r0:r0 + Ho, c0:c0 + Wo, :]       # (Ho, Wo, C)
            acc = acc + patch * wv[idx:idx + 1, :]            # lane broadcast

    # --- folded inference BN + ReLU ------------------------------------------
    y = acc * s_ref[...] + b_ref[...]
    if apply_relu:
        y = jnp.maximum(y, 0.0)
    out_ref[0] = y.astype(out_ref.dtype)


# ----------------------------------------------------------------------------
# Wrapper: BN folding, layout conversion, pallas_call plumbing.
# ----------------------------------------------------------------------------
@functools.partial(jax.jit,
                   static_argnames=("kernel_size", "padding", "dilation",
                                    "relu", "bn"))
def basic_sep_conv_forward(x_nchw, params, *, kernel_size, padding,
                           dilation=1, relu=True, bn=True):
    N, C, H, W = x_nchw.shape
    K, p, d = kernel_size, padding, dilation
    eps = 1e-5

    Ho = H + 2 * p - d * (K - 1)
    Wo = W + 2 * p - d * (K - 1)

    # Sublane-aligned left offset for the staged interior (>= pad, multiple of 8).
    LPAD = 8 * max(1, -(-p // 8))
    WP = LPAD + W + p if p > 0 else LPAD + W

    # NCHW -> NHWC (channels -> lane dim).
    x_nhwc = jnp.transpose(x_nchw, (0, 2, 3, 1)).astype(jnp.float32)

    # Depthwise weight (C, 1, K, K) -> tap-major (K*K, C).
    w = params["w"]
    w_k = jnp.transpose(w[:, 0, :, :].reshape(C, K * K), (1, 0)).astype(jnp.float32)

    # Fold inference BatchNorm into per-channel scale / bias.
    if bn:
        gamma, beta, mean, var = params["bn"]
        scale = gamma / jnp.sqrt(var + eps)
        bias = beta - mean * scale
    else:
        scale = jnp.ones((C,), jnp.float32)
        bias = jnp.zeros((C,), jnp.float32)
    scale = scale[None, :].astype(jnp.float32)
    bias = bias[None, :].astype(jnp.float32)

    kernel = functools.partial(_sepconv_kernel, K=K, pad=p, dil=d,
                               lpad=LPAD, apply_relu=relu)

    out_nhwc = pl.pallas_call(
        kernel,
        out_shape=jax.ShapeDtypeStruct((N, Ho, Wo, C), jnp.float32),
        grid_spec=pltpu.PrefetchScalarGridSpec(
            num_scalar_prefetch=0,
            grid=(N,),
            in_specs=[
                pl.BlockSpec((1, H, W, C), lambda n: (n, 0, 0, 0)),
                pl.BlockSpec((K * K, C), lambda n: (0, 0)),
                pl.BlockSpec((1, C), lambda n: (0, 0)),
                pl.BlockSpec((1, C), lambda n: (0, 0)),
            ],
            out_specs=pl.BlockSpec((1, Ho, Wo, C), lambda n: (n, 0, 0, 0)),
            scratch_shapes=[
                pltpu.VMEM((H + 2 * p, WP, C), jnp.float32),
            ],
        ),
        compiler_params=pltpu.CompilerParams(
            dimension_semantics=("parallel",)),
    )(x_nhwc, w_k, scale, bias)

    # NHWC -> NCHW to match the PyTorch module output.
    return jnp.transpose(out_nhwc, (0, 3, 1, 2))


# ----------------------------------------------------------------------------
# Pure-JAX reference (lax depthwise conv) for a correctness check.
# ----------------------------------------------------------------------------
def _ref_forward(x, params, *, kernel_size, padding, dilation=1,
                 relu=True, bn=True):
    C = x.shape[1]
    y = lax.conv_general_dilated(
        x, params["w"], window_strides=(1, 1),
        padding=[(padding, padding), (padding, padding)],
        rhs_dilation=(dilation, dilation),
        dimension_numbers=("NCHW", "OIHW", "NCHW"),
        feature_group_count=C)
    if bn:
        gamma, beta, mean, var = params["bn"]
        y = (y - mean[None, :, None, None]) / jnp.sqrt(
            var[None, :, None, None] + 1e-5)
        y = y * gamma[None, :, None, None] + beta[None, :, None, None]
    if relu:
        y = jnp.maximum(y, 0.0)
    return y


# ----------------------------------------------------------------------------
if __name__ == "__main__":
    key = jax.random.PRNGKey(0)
    kx, kw, kb = jax.random.split(key, 3)

    # BasicSepConv(in_planes=4, kernel_size=3, stride=1, padding=1)
    N, C, H, W = 2, 4, 16, 16
    K, P, D = 3, 1, 1

    x = jax.random.normal(kx, (N, C, H, W), jnp.float32)

    w = 0.3 * jax.random.normal(kw, (C, 1, K, K), jnp.float32)  # depthwise OIHW
    k1, k2, k3, k4 = jax.random.split(kb, 4)
    gamma = 0.5 + jax.random.uniform(k1, (C,), jnp.float32)
    beta = 0.1 * jax.random.normal(k2, (C,), jnp.float32)
    mean = 0.1 * jax.random.normal(k3, (C,), jnp.float32)
    var = 0.5 + jax.random.uniform(k4, (C,), jnp.float32)
    params = {"w": w, "bn": (gamma, beta, mean, var)}

    out = basic_sep_conv_forward(x, params, kernel_size=K, padding=P, dilation=D)
    out = jax.block_until_ready(out)

    ref = jax.block_until_ready(
        _ref_forward(x, params, kernel_size=K, padding=P, dilation=D))

    assert out.shape == (N, C, H, W), out.shape
    max_err = float(jnp.max(jnp.abs(out - ref)))
    assert jnp.allclose(out, ref, atol=1e-4, rtol=1e-4), max_err

    print("KERNEL_OK")
</pallas_src>

<mosaic_0001>
module attributes {stable_mosaic.version = 11 : i64} {
  func.func @_sepconv_kernel(%arg0: i32, %arg1: memref<1x16x16x4xf32, #tpu.memory_space<vmem>>, %arg2: memref<9x4xf32, #tpu.memory_space<vmem>>, %arg3: memref<1x4xf32, #tpu.memory_space<vmem>>, %arg4: memref<1x4xf32, #tpu.memory_space<vmem>>, %arg5: memref<1x16x16x4xf32, #tpu.memory_space<vmem>>, %arg6: memref<18x25x4xf32, #tpu.memory_space<vmem>>) attributes {dimension_semantics = [#tpu.dimension_semantics<parallel>], iteration_bounds = array<i64: 2>, scalar_prefetch = 0 : i64, scratch_operands = 1 : i64, tpu.core_type = #tpu.core_type<tc>, window_params = [{transform_indices = @transform_0, window_bounds = array<i64: 1, 16, 16, 4>}, {pipeline_mode = #tpu.pipeline_mode<synchronous>, transform_indices = @transform_1, window_bounds = array<i64: 9, 4>}, {pipeline_mode = #tpu.pipeline_mode<synchronous>, transform_indices = @transform_2, window_bounds = array<i64: 1, 4>}, {pipeline_mode = #tpu.pipeline_mode<synchronous>, transform_indices = @transform_3, window_bounds = array<i64: 1, 4>}, {transform_indices = @transform_4, window_bounds = array<i64: 1, 16, 16, 4>}]} {
    %cst = arith.constant 0.000000e+00 : f32
    %0 = vector.broadcast %cst : f32 to vector<1x25x4xf32>
    %c0 = arith.constant 0 : index
    %c0_0 = arith.constant 0 : index
    %c0_1 = arith.constant 0 : index
    %1 = vector.load %arg6[%c0, %c0_0, %c0_1] : memref<18x25x4xf32, #tpu.memory_space<vmem>>, vector<1x25x4xf32>
    tpu.vector_store %arg6[%c0, %c0_0, %c0_1], %0 {strides = array<i32>} : memref<18x25x4xf32, #tpu.memory_space<vmem>>, vector<1x25x4xf32>,
    %cst_2 = arith.constant 0.000000e+00 : f32
    %2 = vector.broadcast %cst_2 : f32 to vector<1x25x4xf32>
    %c17 = arith.constant 17 : index
    %c0_3 = arith.constant 0 : index
    %c0_4 = arith.constant 0 : index
    %3 = vector.load %arg6[%c17, %c0_3, %c0_4] : memref<18x25x4xf32, #tpu.memory_space<vmem>>, vector<1x25x4xf32>
    tpu.vector_store %arg6[%c17, %c0_3, %c0_4], %2 {strides = array<i32>} : memref<18x25x4xf32, #tpu.memory_space<vmem>>, vector<1x25x4xf32>,
    %cst_5 = arith.constant 0.000000e+00 : f32
    %4 = vector.broadcast %cst_5 : f32 to vector<16x1x4xf32>
    %c1 = arith.constant 1 : index
    %c7 = arith.constant 7 : index
    %c0_6 = arith.constant 0 : index
    %5 = vector.load %arg6[%c1, %c7, %c0_6] : memref<18x25x4xf32, #tpu.memory_space<vmem>>, vector<16x1x4xf32>
    tpu.vector_store %arg6[%c1, %c7, %c0_6], %4 {strides = array<i32>} : memref<18x25x4xf32, #tpu.memory_space<vmem>>, vector<16x1x4xf32>,
    %cst_7 = arith.constant 0.000000e+00 : f32
    %6 = vector.broadcast %cst_7 : f32 to vector<16x1x4xf32>
    %c1_8 = arith.constant 1 : index
    %c24 = arith.constant 24 : index
    %c0_9 = arith.constant 0 : index
    %7 = vector.load %arg6[%c1_8, %c24, %c0_9] : memref<18x25x4xf32, #tpu.memory_space<vmem>>, vector<16x1x4xf32>
    tpu.vector_store %arg6[%c1_8, %c24, %c0_9], %6 {strides = array<i32>} : memref<18x25x4xf32, #tpu.memory_space<vmem>>, vector<16x1x4xf32>,
    %c0_10 = arith.constant 0 : index
    %c0_11 = arith.constant 0 : index
    %c0_12 = arith.constant 0 : index
    %c0_13 = arith.constant 0 : index
    %8 = vector.load %arg1[%c0_10, %c0_11, %c0_12, %c0_13] : memref<1x16x16x4xf32, #tpu.memory_space<vmem>>, vector<1x16x16x4xf32>
    %9 = vector.shape_cast %8 : vector<1x16x16x4xf32> to vector<16x16x4xf32>
    %c1_14 = arith.constant 1 : index
    %c8 = arith.constant 8 : index
    %c0_15 = arith.constant 0 : index
    %10 = vector.load %arg6[%c1_14, %c8, %c0_15] : memref<18x25x4xf32, #tpu.memory_space<vmem>>, vector<16x16x4xf32>
    tpu.vector_store %arg6[%c1_14, %c8, %c0_15], %9 {strides = array<i32>} : memref<18x25x4xf32, #tpu.memory_space<vmem>>, vector<16x16x4xf32>,
    %c0_16 = arith.constant 0 : index
    %c0_17 = arith.constant 0 : index
    %11 = vector.load %arg2[%c0_16, %c0_17] : memref<9x4xf32, #tpu.memory_space<vmem>>, vector<9x4xf32>
    %cst_18 = arith.constant 0.000000e+00 : f32
    %12 = vector.broadcast %cst_18 : f32 to vector<16x16x4xf32>
    %c0_19 = arith.constant 0 : index
    %c7_20 = arith.constant 7 : index
    %c0_21 = arith.constant 0 : index
    %13 = vector.load %arg6[%c0_19, %c7_20, %c0_21] : memref<18x25x4xf32, #tpu.memory_space<vmem>>, vector<16x16x4xf32>
    %14 = vector.extract_strided_slice %11 {offsets = [0, 0], sizes = [1, 4], strides = [1, 1]} : vector<9x4xf32> to vector<1x4xf32>
    %15 = vector.shape_cast %14 : vector<1x4xf32> to vector<1x1x4xf32>
    %16 = vector.broadcast %15 : vector<1x1x4xf32> to vector<16x16x4xf32>
    %17 = arith.mulf %13, %16 : vector<16x16x4xf32>
    %18 = arith.addf %12, %17 : vector<16x16x4xf32>
    %c0_22 = arith.constant 0 : index
    %c8_23 = arith.constant 8 : index
    %c0_24 = arith.constant 0 : index
    %19 = vector.load %arg6[%c0_22, %c8_23, %c0_24] : memref<18x25x4xf32, #tpu.memory_space<vmem>>, vector<16x16x4xf32>
    %20 = vector.extract_strided_slice %11 {offsets = [1, 0], sizes = [1, 4], strides = [1, 1]} : vector<9x4xf32> to vector<1x4xf32>
    %21 = vector.shape_cast %20 : vector<1x4xf32> to vector<1x1x4xf32>
    %22 = vector.broadcast %21 : vector<1x1x4xf32> to vector<16x16x4xf32>
    %23 = arith.mulf %19, %22 : vector<16x16x4xf32>
    %24 = arith.addf %18, %23 : vector<16x16x4xf32>
    %c0_25 = arith.constant 0 : index
    %c9 = arith.constant 9 : index
    %c0_26 = arith.constant 0 : index
    %25 = vector.load %arg6[%c0_25, %c9, %c0_26] : memref<18x25x4xf32, #tpu.memory_space<vmem>>, vector<16x16x4xf32>
    %26 = vector.extract_strided_slice %11 {offsets = [2, 0], sizes = [1, 4], strides = [1, 1]} : vector<9x4xf32> to vector<1x4xf32>
    %27 = vector.shape_cast %26 : vector<1x4xf32> to vector<1x1x4xf32>
    %28 = vector.broadcast %27 : vector<1x1x4xf32> to vector<16x16x4xf32>
    %29 = arith.mulf %25, %28 : vector<16x16x4xf32>
    %30 = arith.addf %24, %29 : vector<16x16x4xf32>
    %c1_27 = arith.constant 1 : index
    %c7_28 = arith.constant 7 : index
    %c0_29 = arith.constant 0 : index
    %31 = vector.load %arg6[%c1_27, %c7_28, %c0_29] : memref<18x25x4xf32, #tpu.memory_space<vmem>>, vector<16x16x4xf32>
    %32 = vector.extract_strided_slice %11 {offsets = [3, 0], sizes = [1, 4], strides = [1, 1]} : vector<9x4xf32> to vector<1x4xf32>
    %33 = vector.shape_cast %32 : vector<1x4xf32> to vector<1x1x4xf32>
    %34 = vector.broadcast %33 : vector<1x1x4xf32> to vector<16x16x4xf32>
    %35 = arith.mulf %31, %34 : vector<16x16x4xf32>
    %36 = arith.addf %30, %35 : vector<16x16x4xf32>
    %c1_30 = arith.constant 1 : index
    %c8_31 = arith.constant 8 : index
    %c0_32 = arith.constant 0 : index
    %37 = vector.load %arg6[%c1_30, %c8_31, %c0_32] : memref<18x25x4xf32, #tpu.memory_space<vmem>>, vector<16x16x4xf32>
    %38 = vector.extract_strided_slice %11 {offsets = [4, 0], sizes = [1, 4], strides = [1, 1]} : vector<9x4xf32> to vector<1x4xf32>
    %39 = vector.shape_cast %38 : vector<1x4xf32> to vector<1x1x4xf32>
    %40 = vector.broadcast %39 : vector<1x1x4xf32> to vector<16x16x4xf32>
    %41 = arith.mulf %37, %40 : vector<16x16x4xf32>
    %42 = arith.addf %36, %41 : vector<16x16x4xf32>
    %c1_33 = arith.constant 1 : index
    %c9_34 = arith.constant 9 : index
    %c0_35 = arith.constant 0 : index
    %43 = vector.load %arg6[%c1_33, %c9_34, %c0_35] : memref<18x25x4xf32, #tpu.memory_space<vmem>>, vector<16x16x4xf32>
    %44 = vector.extract_strided_slice %11 {offsets = [5, 0], sizes = [1, 4], strides = [1, 1]} : vector<9x4xf32> to vector<1x4xf32>
    %45 = vector.shape_cast %44 : vector<1x4xf32> to vector<1x1x4xf32>
    %46 = vector.broadcast %45 : vector<1x1x4xf32> to vector<16x16x4xf32>
    %47 = arith.mulf %43, %46 : vector<16x16x4xf32>
    %48 = arith.addf %42, %47 : vector<16x16x4xf32>
    %c2 = arith.constant 2 : index
    %c7_36 = arith.constant 7 : index
    %c0_37 = arith.constant 0 : index
    %49 = vector.load %arg6[%c2, %c7_36, %c0_37] : memref<18x25x4xf32, #tpu.memory_space<vmem>>, vector<16x16x4xf32>
    %50 = vector.extract_strided_slice %11 {offsets = [6, 0], sizes = [1, 4], strides = [1, 1]} : vector<9x4xf32> to vector<1x4xf32>
    %51 = vector.shape_cast %50 : vector<1x4xf32> to vector<1x1x4xf32>
    %52 = vector.broadcast %51 : vector<1x1x4xf32> to vector<16x16x4xf32>
    %53 = arith.mulf %49, %52 : vector<16x16x4xf32>
    %54 = arith.addf %48, %53 : vector<16x16x4xf32>
    %c2_38 = arith.constant 2 : index
    %c8_39 = arith.constant 8 : index
    %c0_40 = arith.constant 0 : index
    %55 = vector.load %arg6[%c2_38, %c8_39, %c0_40] : memref<18x25x4xf32, #tpu.memory_space<vmem>>, vector<16x16x4xf32>
    %56 = vector.extract_strided_slice %11 {offsets = [7, 0], sizes = [1, 4], strides = [1, 1]} : vector<9x4xf32> to vector<1x4xf32>
    %57 = vector.shape_cast %56 : vector<1x4xf32> to vector<1x1x4xf32>
    %58 = vector.broadcast %57 : vector<1x1x4xf32> to vector<16x16x4xf32>
    %59 = arith.mulf %55, %58 : vector<16x16x4xf32>
    %60 = arith.addf %54, %59 : vector<16x16x4xf32>
    %c2_41 = arith.constant 2 : index
    %c9_42 = arith.constant 9 : index
    %c0_43 = arith.constant 0 : index
    %61 = vector.load %arg6[%c2_41, %c9_42, %c0_43] : memref<18x25x4xf32, #tpu.memory_space<vmem>>, vector<16x16x4xf32>
    %62 = vector.extract_strided_slice %11 {offsets = [8, 0], sizes = [1, 4], strides = [1, 1]} : vector<9x4xf32> to vector<1x4xf32>
    %63 = vector.shape_cast %62 : vector<1x4xf32> to vector<1x1x4xf32>
    %64 = vector.broadcast %63 : vector<1x1x4xf32> to vector<16x16x4xf32>
    %65 = arith.mulf %61, %64 : vector<16x16x4xf32>
    %66 = arith.addf %60, %65 : vector<16x16x4xf32>
    %c0_44 = arith.constant 0 : index
    %c0_45 = arith.constant 0 : index
    %67 = vector.load %arg3[%c0_44, %c0_45] : memref<1x4xf32, #tpu.memory_space<vmem>>, vector<1x4xf32>
    %68 = vector.shape_cast %67 : vector<1x4xf32> to vector<1x1x4xf32>
    %69 = vector.broadcast %68 : vector<1x1x4xf32> to vector<16x16x4xf32>
    %70 = arith.mulf %66, %69 : vector<16x16x4xf32>
    %c0_46 = arith.constant 0 : index
    %c0_47 = arith.constant 0 : index
    %71 = vector.load %arg4[%c0_46, %c0_47] : memref<1x4xf32, #tpu.memory_space<vmem>>, vector<1x4xf32>
    %72 = vector.shape_cast %71 : vector<1x4xf32> to vector<1x1x4xf32>
    %73 = vector.broadcast %72 : vector<1x1x4xf32> to vector<16x16x4xf32>
    %74 = arith.addf %70, %73 : vector<16x16x4xf32>
    %cst_48 = arith.constant 0.000000e+00 : f32
    %75 = vector.broadcast %cst_48 : f32 to vector<16x16x4xf32>
    %76 = arith.maximumf %74, %75 : vector<16x16x4xf32>
    %c0_49 = arith.constant 0 : index
    %c0_50 = arith.constant 0 : index
    %c0_51 = arith.constant 0 : index
    %c0_52 = arith.constant 0 : index
    %77 = vector.load %arg5[%c0_49, %c0_50, %c0_51, %c0_52] : memref<1x16x16x4xf32, #tpu.memory_space<vmem>>, vector<1x16x16x4xf32>
    %78 = vector.shape_cast %77 : vector<1x16x16x4xf32> to vector<16x16x4xf32>
    %79 = vector.shape_cast %76 : vector<16x16x4xf32> to vector<1x16x16x4xf32>
    tpu.vector_store %arg5[%c0_49, %c0_50, %c0_51, %c0_52], %79 {strides = array<i32>} : memref<1x16x16x4xf32, #tpu.memory_space<vmem>>, vector<1x16x16x4xf32>,
    return
  }
  func.func @transform_0(%arg0: i32) -> (i32, i32, i32, i32) {
    %c0_i32 = arith.constant 0 : i32
    %c0_i32_0 = arith.constant 0 : i32
    %c0_i32_1 = arith.constant 0 : i32
    %c0_i32_2 = arith.constant 0 : i32
    return %arg0, %c0_i32, %c0_i32_0, %c0_i32_1 : i32, i32, i32, i32
  }
  func.func @transform_1(%arg0: i32) -> (i32, i32) {
    %c0_i32 = arith.constant 0 : i32
    %c0_i32_0 = arith.constant 0 : i32
    %c0_i32_1 = arith.constant 0 : i32
    return %c0_i32, %c0_i32_0 : i32, i32
  }
  func.func @transform_2(%arg0: i32) -> (i32, i32) {
    %c0_i32 = arith.constant 0 : i32
    %c0_i32_0 = arith.constant 0 : i32
    %c0_i32_1 = arith.constant 0 : i32
    return %c0_i32, %c0_i32_0 : i32, i32
  }
  func.func @transform_3(%arg0: i32) -> (i32, i32) {
    %c0_i32 = arith.constant 0 : i32
    %c0_i32_0 = arith.constant 0 : i32
    %c0_i32_1 = arith.constant 0 : i32
    return %c0_i32, %c0_i32_0 : i32, i32
  }
  func.func @transform_4(%arg0: i32) -> (i32, i32, i32, i32) {
    %c0_i32 = arith.constant 0 : i32
    %c0_i32_0 = arith.constant 0 : i32
    %c0_i32_1 = arith.constant 0 : i32
    %c0_i32_2 = arith.constant 0 : i32
    return %arg0, %c0_i32, %c0_i32_0, %c0_i32_1 : i32, i32, i32, i32
  }
}

</mosaic_0001>

<bundles_post_ra>
// kernel: basic_sep_conv_forward.1
= control target key start
LH: loop header
LB: loop body
LE: loop exit
PB: predicated region body
PF: predicated region fallthrough
CT: control target
= control target key end

     0   :  { %s1468_s15 = smov 0   ;;  %s2510_s0 = inlined_call_operand.vmem [shape: f32[2,16,16,4], index: 0, kind: input, shape index: {}]   ;;  %s2511_s1 = inlined_call_operand.vmem [shape: f32[9,4], index: 1, kind: input, shape index: {}]   ;;  %s2512_s2 = inlined_call_operand.vmem [shape: f32[1,4], index: 2, kind: input, shape index: {}]   ;;  %s2513_s3 = inlined_call_operand.vmem [shape: f32[1,4], index: 3, kind: input, shape index: {}]   ;;  %s2514_s4 = inlined_call_operand.vmem [shape: f32[2,16,16,4], index: 4, kind: output, shape index: {}]  }
   0x1 LB: > { %s1406_s16 = sadd.s32 4294967295, %s1440_s15   ;;  %p1410_p0 = scmp.ge.s32.totalorder %s1440_s15, 1  ;;  %s1440_s15 = sphi %s1468_s15, %s14_s15  }
   0x2   : > { %p162_p1 = scmp.lt.s32.totalorder %s1440_s15, 3 }
   0x4   : > { %p163_p2 = pnand %p1410_p0, %p162_p1 }
   0x5   : > { %p1478_p3 = scmp.lt.s32.totalorder (!%p163_p2), %s1406_s16, 1 }
   0x6   : > { %166 = sbr.rel (%p163_p2) target bundleno = 214 (0xd6), region = 36 }
   0xb   : > { %vm198_vm0 = vcmask 31744   ;;  %vm202_vm1 = vcmask 24576   ;;  %v1442_v0 = vmov 0.0   ;;  %v340_v1 = vlaneseq  ;;  %s2517_s16 = smov (!%p1478_p3, %s1406_s16), 1  ;;  %v1556_v12 = vld [vmem:[%s2511_s1] sm:$0xff] }
   0xc   : > { %199 = vst.msk [vmem:[#allocation2] sm:$0xff] %vm198_vm0, %v1442_v0  ;;  %200 = vst.msk [vmem:[#allocation2 + $0x8] sm:$0xff] %vm198_vm0, %v1442_v0  ;;  %s1420_s18 = sshll.u32 %s2517_s16, 8  ;;  %v1640_v56 = vld [vmem:[%s2511_s1 + $0x8] ss:$0 sm:$0xff] }
   0xd   : > { %201 = vst.msk [vmem:[#allocation2 + $0x10] sm:$0xff] %vm198_vm0, %v1442_v0  ;;  %205 = vst.msk [vmem:[#allocation2 + $0x220] sm:$0xff] %vm198_vm0, %v1442_v0  ;;  %s1534_s21 = scalar_lea.vmem %s2510_s0, %s1420_s18  ;;  %v1536_v2 = vshrl.u32 %v340_v1, 7  ;;  %s1752_s6 = scalar_lea.vmem %s2514_s4, %s1420_s18 }
   0xe   : > { %206 = vst.msk [vmem:[#allocation2 + $0x228] sm:$0xff] %vm198_vm0, %v1442_v0  ;;  %207 = vst.msk [vmem:[#allocation2 + $0x230] sm:$0xff] %vm198_vm0, %v1442_v0  ;;  %v242_v3 = vld [vmem:[%s1534_s21] sm:$0xff]  ;;  %v243_v4 = vld [vmem:[%s1534_s21 + $0x8] sm:$0xff] }
   0xf   : > { %203 = vst.msk [vmem:[#allocation2 + $0x18] sm:$0x1] %vm202_vm1, %v1442_v0  ;;  %208 = vst.msk [vmem:[#allocation2 + $0x238] sm:$0x1] %vm202_vm1, %v1442_v0  ;;  %v244_v5 = vld [vmem:[%s1534_s21 + $0x10] sm:$0xff]  ;;  %v245_v6 = vld [vmem:[%s1534_s21 + $0x18] sm:$0xff] }
  0x10   : > { %210 = vst.msk [vmem:[#allocation2 + $0x27] sm:$0x1] %vm202_vm1, %v1442_v0  ;;  %211 = vst.msk [vmem:[#allocation2 + $0x47] sm:$0x1] %vm202_vm1, %v1442_v0  ;;  %v246_v7 = vld [vmem:[%s1534_s21 + $0x20] sm:$0xff]  ;;  %v247_v8 = vld [vmem:[%s1534_s21 + $0x28] sm:$0xff] }
  0x11   : > { %212 = vst.msk [vmem:[#allocation2 + $0x67] sm:$0x1] %vm202_vm1, %v1442_v0  ;;  %213 = vst.msk [vmem:[#allocation2 + $0x87] sm:$0x1] %vm202_vm1, %v1442_v0  ;;  %v248_v9 = vld [vmem:[%s1534_s21 + $0x30] sm:$0xff]  ;;  %v249_v10 = vld [vmem:[%s1534_s21 + $0x38] sm:$0xff] }
  0x12   : > { %214 = vst.msk [vmem:[#allocation2 + $0xa7] sm:$0x1] %vm202_vm1, %v1442_v0  ;;  %215 = vst.msk [vmem:[#allocation2 + $0xc7] sm:$0x1] %vm202_vm1, %v1442_v0  ;;  %v250_v11 = vld [vmem:[%s1534_s21 + $0x40] sm:$0xff]  ;;  %v251_v13 = vld [vmem:[%s1534_s21 + $0x48] sm:$0xff] }
  0x13   : > { %216 = vst.msk [vmem:[#allocation2 + $0xe7] sm:$0x1] %vm202_vm1, %v1442_v0  ;;  %217 = vst.msk [vmem:[#allocation2 + $0x107] sm:$0x1] %vm202_vm1, %v1442_v0  ;;  %v252_v14 = vld [vmem:[%s1534_s21 + $0x50] sm:$0xff]  ;;  %v253_v15 = vld [vmem:[%s1534_s21 + $0x58] sm:$0xff] }
  0x14   : > { %218 = vst.msk [vmem:[#allocation2 + $0x127] sm:$0x1] %vm202_vm1, %v1442_v0  ;;  %219 = vst.msk [vmem:[#allocation2 + $0x147] sm:$0x1] %vm202_vm1, %v1442_v0  ;;  %v342_v16 = vsub.s32 0, %v1536_v2  ;;  %v254_v17 = vld [vmem:[%s1534_s21 + $0x60] sm:$0xff] }
  0x15   : > { %220 = vst.msk [vmem:[#allocation2 + $0x167] sm:$0x1] %vm202_vm1, %v1442_v0  ;;  %221 = vst.msk [vmem:[#allocation2 + $0x187] sm:$0x1] %vm202_vm1, %v1442_v0  ;;  %v255_v18 = vld [vmem:[%s1534_s21 + $0x68] sm:$0xff]  ;;  %v256_v19 = vld [vmem:[%s1534_s21 + $0x70] sm:$0xff] }
  0x16   : > { %222 = vst.msk [vmem:[#allocation2 + $0x1a7] sm:$0x1] %vm202_vm1, %v1442_v0  ;;  %223 = vst.msk [vmem:[#allocation2 + $0x1c7] sm:$0x1] %vm202_vm1, %v1442_v0  ;;  %v442_v20 = vsub.s32 1, %v1536_v2  ;;  %v542_v21 = vsub.s32 2, %v1536_v2  ;;  %v1593_v32 = vrot.slane %v1556_v12, %v342_v16 }
  0x17   : > { %224 = vst.msk [vmem:[#allocation2 + $0x1e7] sm:$0x1] %vm202_vm1, %v1442_v0  ;;  %225 = vst.msk [vmem:[#allocation2 + $0x207] sm:$0x1] %vm202_vm1, %v1442_v0  ;;  %v257_v22 = vld [vmem:[%s1534_s21 + $0x78] sm:$0xff]  ;;  %v258_v23 = vld [vmem:[%s1534_s21 + $0x80] sm:$0xff] }
  0x18   : > { %226 = vst.msk [vmem:[#allocation2 + $0x38] sm:$0x1] %vm202_vm1, %v1442_v0  ;;  %227 = vst.msk [vmem:[#allocation2 + $0x58] sm:$0x1] %vm202_vm1, %v1442_v0  ;;  %v259_v24 = vld [vmem:[%s1534_s21 + $0x88] sm:$0xff]  ;;  %v260_v25 = vld [vmem:[%s1534_s21 + $0x90] sm:$0xff]  ;;  %v1605_v39 = vrot.slane %v1556_v12, %v442_v20  ;;  %v1608_v40 = vrot.slane %v1556_v12, %v542_v21 }
  0x19   : > { %228 = vst.msk [vmem:[#allocation2 + $0x78] sm:$0x1] %vm202_vm1, %v1442_v0  ;;  %229 = vst.msk [vmem:[#allocation2 + $0x98] sm:$0x1] %vm202_vm1, %v1442_v0  ;;  %v261_v26 = vld [vmem:[%s1534_s21 + $0x98] sm:$0xff]  ;;  %v262_v27 = vld [vmem:[%s1534_s21 + $0xa0] sm:$0xff] }
  0x1a   : > { %230 = vst.msk [vmem:[#allocation2 + $0xb8] sm:$0x1] %vm202_vm1, %v1442_v0  ;;  %231 = vst.msk [vmem:[#allocation2 + $0xd8] sm:$0x1] %vm202_vm1, %v1442_v0  ;;  %v642_v28 = vsub.s32 3, %v1536_v2  ;;  %v263_v29 = vld [vmem:[%s1534_s21 + $0xa8] sm:$0xff] }
  0x1b   : > { %232 = vst.msk [vmem:[#allocation2 + $0xf8] sm:$0x1] %vm202_vm1, %v1442_v0  ;;  %233 = vst.msk [vmem:[#allocation2 + $0x118] sm:$0x1] %vm202_vm1, %v1442_v0  ;;  %v264_v30 = vld [vmem:[%s1534_s21 + $0xb0] sm:$0xff]  ;;  %v265_v31 = vld [vmem:[%s1534_s21 + $0xb8] sm:$0xff] }
  0x1c   : > { %234 = vst.msk [vmem:[#allocation2 + $0x138] sm:$0x1] %vm202_vm1, %v1442_v0  ;;  %235 = vst.msk [vmem:[#allocation2 + $0x158] sm:$0x1] %vm202_vm1, %v1442_v0  ;;  %v742_v33 = vsub.s32 4, %v1536_v2  ;;  %v842_v34 = vsub.s32 5, %v1536_v2  ;;  %v1623_v48 = vrot.slane %v1556_v12, %v642_v28 }
  0x1d   : > { %236 = vst.msk [vmem:[#allocation2 + $0x178] sm:$0x1] %vm202_vm1, %v1442_v0  ;;  %237 = vst.msk [vmem:[#allocation2 + $0x198] sm:$0x1] %vm202_vm1, %v1442_v0  ;;  %v943_v35 = vsub.s32 6, %v1536_v2  ;;  %v266_v36 = vld [vmem:[%s1534_s21 + $0xc0] sm:$0xff] }
  0x1e   : > { %238 = vst.msk [vmem:[#allocation2 + $0x1b8] sm:$0x1] %vm202_vm1, %v1442_v0  ;;  %239 = vst.msk [vmem:[#allocation2 + $0x1d8] sm:$0x1] %vm202_vm1, %v1442_v0  ;;  %v267_v37 = vld [vmem:[%s1534_s21 + $0xc8] sm:$0xff]  ;;  %v268_v38 = vld [vmem:[%s1534_s21 + $0xd0] sm:$0xff]  ;;  %v1629_v53 = vrot.slane %v1556_v12, %v742_v33  ;;  %v1632_v54 = vrot.slane %v1556_v12, %v842_v34 }
  0x1f   : > { %240 = vst.msk [vmem:[#allocation2 + $0x1f8] sm:$0x1] %vm202_vm1, %v1442_v0  ;;  %241 = vst.msk [vmem:[#allocation2 + $0x218] sm:$0x1] %vm202_vm1, %v1442_v0  ;;  %v1043_v41 = vsub.s32 7, %v1536_v2  ;;  %v269_v42 = vld [vmem:[%s1534_s21 + $0xd8] sm:$0xff]  ;;  %v1635_v55 = vrot.slane %v1556_v12, %v943_v35 }
  0x20   : > { %274 = vst.msk [vmem:[#allocation2 + $0x28] sm:$0xff] %vm198_vm0, %v242_v3  ;;  %275 = vst.msk [vmem:[#allocation2 + $0x30] sm:$0xff] %vm198_vm0, %v243_v4  ;;  %v270_v43 = vld [vmem:[%s1534_s21 + $0xe0] sm:$0xff]  ;;  %v271_v44 = vld [vmem:[%s1534_s21 + $0xe8] sm:$0xff] }
  0x21   : > { %276 = vst.msk [vmem:[#allocation2 + $0x48] sm:$0xff] %vm198_vm0, %v244_v5  ;;  %277 = vst.msk [vmem:[#allocation2 + $0x50] sm:$0xff] %vm198_vm0, %v245_v6  ;;  %v272_v45 = vld [vmem:[%s1534_s21 + $0xf0] sm:$0xff]  ;;  %v273_v46 = vld [vmem:[%s1534_s21 + $0xf8] sm:$0xff]  ;;  %v1645_v62 = vrot.slane %v1556_v12, %v1043_v41 }
  0x22   : > { %278 = vst.msk [vmem:[#allocation2 + $0x68] sm:$0xff] %vm198_vm0, %v246_v7  ;;  %279 = vst.msk [vmem:[#allocation2 + $0x70] sm:$0xff] %vm198_vm0, %v247_v8  ;;  %v308_v47 = vld [vmem:[#allocation2 + $0x7] sm:$0xff]  ;;  %v309_v2 = vld [vmem:[#allocation2 + $0xf] sm:$0xff] }
  0x23   : > { %280 = vst.msk [vmem:[#allocation2 + $0x88] sm:$0xff] %vm198_vm0, %v248_v9  ;;  %281 = vst.msk [vmem:[#allocation2 + $0x90] sm:$0xff] %vm198_vm0, %v249_v10  ;;  %v344_v49 = vmul.f32 %v1593_v32, %v308_v47  ;;  %v408_v50 = vld [vmem:[#allocation2 + $0x8] sm:$0xff]  ;;  %v345_v6 = vmul.f32 %v1593_v32, %v309_v2  ;;  %v409_v7 = vld [vmem:[#allocation2 + $0x10] sm:$0xff] }
  0x24   : > { %282 = vst.msk [vmem:[#allocation2 + $0xa8] sm:$0xff] %vm198_vm0, %v250_v11  ;;  %283 = vst.msk [vmem:[#allocation2 + $0xb0] sm:$0xff] %vm198_vm0, %v251_v13  ;;  %v508_v51 = vld [vmem:[#allocation2 + $0x9] sm:$0xff]  ;;  %v444_v57 = vmul.f32 %v1605_v39, %v408_v50  ;;  %v509_v8 = vld [vmem:[#allocation2 + $0x11] sm:$0xff]  ;;  %v445_v11 = vmul.f32 %v1605_v39, %v409_v7 }
  0x25   : > { %284 = vst.msk [vmem:[#allocation2 + $0xc8] sm:$0xff] %vm198_vm0, %v252_v14  ;;  %285 = vst.msk [vmem:[#allocation2 + $0xd0] sm:$0xff] %vm198_vm0, %v253_v15  ;;  %v544_v58 = vmul.f32 %v1608_v40, %v508_v51  ;;  %v545_v12 = vmul.f32 %v1608_v40, %v509_v8 }
  0x26   : > { %286 = vst.msk [vmem:[#allocation2 + $0xe8] sm:$0xff] %vm198_vm0, %v254_v17  ;;  %287 = vst.msk [vmem:[#allocation2 + $0xf0] sm:$0xff] %vm198_vm0, %v255_v18  ;;  %v476_v4 = vadd.f32 %v444_v57, %v344_v49 }
  0x27   : > { %288 = vst.msk [vmem:[#allocation2 + $0x108] sm:$0xff] %vm198_vm0, %v256_v19  ;;  %289 = vst.msk [vmem:[#allocation2 + $0x110] sm:$0xff] %vm198_vm0, %v257_v22  ;;  %v608_v52 = vld [vmem:[#allocation2 + $0x27] sm:$0xff]  ;;  %v609_v9 = vld [vmem:[#allocation2 + $0x2f] sm:$0xff] }
  0x28   : > { %290 = vst.msk [vmem:[#allocation2 + $0x128] sm:$0xff] %vm198_vm0, %v258_v23  ;;  %291 = vst.msk [vmem:[#allocation2 + $0x130] sm:$0xff] %vm198_vm0, %v259_v24  ;;  %v708_v59 = vld [vmem:[#allocation2 + $0x28] sm:$0xff]  ;;  %v346_v63 = vmul.f32 %v608_v52, %v1593_v32  ;;  %v644_v5 = vmul.f32 %v1623_v48, %v608_v52  ;;  %v709_v13 = vld [vmem:[#allocation2 + $0x30] sm:$0xff]  ;;  %v576_v17 = vadd.f32 %v544_v58, %v476_v4 }
  0x29   : > { %292 = vst.msk [vmem:[#allocation2 + $0x148] sm:$0xff] %vm198_vm0, %v260_v25  ;;  %293 = vst.msk [vmem:[#allocation2 + $0x150] sm:$0xff] %vm198_vm0, %v261_v26  ;;  %v808_v60 = vld [vmem:[#allocation2 + $0x29] sm:$0xff]  ;;  %v446_v3 = vmul.f32 %v708_v59, %v1605_v39  ;;  %v744_v10 = vmul.f32 %v1629_v53, %v708_v59  ;;  %v809_v14 = vld [vmem:[#allocation2 + $0x31] sm:$0xff]  ;;  %v477_v23 = vadd.f32 %v445_v11, %v345_v6 }
  0x2a   : > { %294 = vst.msk [vmem:[#allocation2 + $0x168] sm:$0xff] %vm198_vm0, %v262_v27  ;;  %295 = vst.msk [vmem:[#allocation2 + $0x170] sm:$0xff] %vm198_vm0, %v263_v29  ;;  %v909_v61 = vld [vmem:[#allocation2 + $0x47] sm:$0xff]  ;;  %v1658_v15 = vld [vmem:[#allocation2 + $0x4f] sm:$0xff]  ;;  %v844_v18 = vmul.f32 %v1632_v54, %v808_v60  ;;  %v645_v24 = vmul.f32 %v1623_v48, %v609_v9  ;;  %v546_v26 = vmul.f32 %v808_v60, %v1608_v40 }
  0x2b   : > { %296 = vst.msk [vmem:[#allocation2 + $0x188] sm:$0xff] %vm198_vm0, %v264_v30  ;;  %297 = vst.msk [vmem:[#allocation2 + $0x190] sm:$0xff] %vm198_vm0, %v265_v31  ;;  %v1648_v0 = vld [vmem:[#allocation2 + $0x48] sm:$0xff]  ;;  %v478_v16 = vadd.f32 %v446_v3, %v346_v63  ;;  %v945_v19 = vmul.f32 %v1635_v55, %v909_v61  ;;  %v1664_v21 = vld [vmem:[#allocation2 + $0x50] sm:$0xff]  ;;  %v676_v27 = vadd.f32 %v644_v5, %v576_v17 }
  0x2c   : > { %298 = vst.msk [vmem:[#allocation2 + $0x1a8] sm:$0xff] %vm198_vm0, %v266_v36  ;;  %299 = vst.msk [vmem:[#allocation2 + $0x1b0] sm:$0xff] %vm198_vm0, %v267_v37  ;;  %v1650_v1 = vld [vmem:[#allocation2 + $0x49] sm:$0xff]  ;;  %v1045_v20 = vmul.f32 %v1645_v62, %v1648_v0  ;;  %v1669_v25 = vld [vmem:[#allocation2 + $0x51] sm:$0xff]  ;;  %v745_v28 = vmul.f32 %v1629_v53, %v709_v13  ;;  %v845_v29 = vmul.f32 %v1632_v54, %v809_v14 }
  0x2d   : > { %300 = vst.msk [vmem:[#allocation2 + $0x1c8] sm:$0xff] %vm198_vm0, %v268_v38  ;;  %301 = vst.msk [vmem:[#allocation2 + $0x1d0] sm:$0xff] %vm198_vm0, %v269_v42  ;;  %v1145_v22 = vmul.f32 %v1640_v56, %v1650_v1  ;;  %v946_v30 = vmul.f32 %v1635_v55, %v1658_v15  ;;  %v577_v31 = vadd.f32 %v545_v12, %v477_v23  ;;  %v1679_v36 = vld [vmem:[#allocation2 + $0x67] sm:$0xff]  ;;  %v1700_v2 = vld [vmem:[#allocation2 + $0x6f] sm:$0xff] }
  0x2e   : > { %302 = vst.msk [vmem:[#allocation2 + $0x1e8] sm:$0xff] %vm198_vm0, %v270_v43  ;;  %303 = vst.msk [vmem:[#allocation2 + $0x1f0] sm:$0xff] %vm198_vm0, %v271_v44  ;;  %v1046_v33 = vmul.f32 %v1645_v62, %v1664_v21  ;;  %v578_v34 = vadd.f32 %v546_v26, %v478_v16  ;;  %v646_v35 = vmul.f32 %v909_v61, %v1623_v48  ;;  %v1683_v41 = vld [vmem:[#allocation2 + $0x68] sm:$0xff]  ;;  %v1709_v11 = vld [vmem:[#allocation2 + $0x71] sm:$0xff] }
  0x2f   : > { %304 = vst.msk [vmem:[#allocation2 + $0x208] sm:$0xff] %vm198_vm0, %v272_v45  ;;  %305 = vst.msk [vmem:[#allocation2 + $0x210] sm:$0xff] %vm198_vm0, %v273_v46  ;;  %v776_v37 = vadd.f32 %v744_v10, %v676_v27  ;;  %v1146_v38 = vmul.f32 %v1640_v56, %v1669_v25  ;;  %v1685_v42 = vld [vmem:[#allocation2 + $0x69] sm:$0xff]  ;;  %v347_v43 = vmul.f32 %v609_v9, %v1593_v32  ;;  %v1720_v17 = vld [vmem:[%s2512_s2] ss:$0 sm:$0xff] }
  0x30   : > { %v447_v44 = vmul.f32 %v709_v13, %v1605_v39  ;;  %v677_v45 = vadd.f32 %v645_v24, %v577_v31  ;;  %v678_v46 = vadd.f32 %v646_v35, %v578_v34  ;;  %v746_v47 = vmul.f32 %v1648_v0, %v1629_v53  ;;  %v1707_v10 = vld [vmem:[#allocation2 + $0x70] sm:$0xff] }
  0x31   : > { %v846_v49 = vmul.f32 %v1650_v1, %v1632_v54  ;;  %v876_v50 = vadd.f32 %v844_v18, %v776_v37  ;;  %v947_v51 = vmul.f32 %v1635_v55, %v1679_v36  ;;  %v547_v57 = vmul.f32 %v809_v14, %v1608_v40 }
  0x32   : > { %v479_v52 = vadd.f32 %v447_v44, %v347_v43  ;;  %v777_v58 = vadd.f32 %v745_v28, %v677_v45  ;;  %v778_v59 = vadd.f32 %v746_v47, %v678_v46  ;;  %v1047_v60 = vmul.f32 %v1645_v62, %v1683_v41  ;;  %v1731_v28 = vld [vmem:[%s2513_s3] ss:$0 sm:$0xff] }
  0x33   : > { %v1147_v63 = vmul.f32 %v1640_v56, %v1685_v42  ;;  %v977_v3 = vadd.f32 %v945_v19, %v876_v50  ;;  %v647_v5 = vmul.f32 %v1658_v15, %v1623_v48  ;;  %v348_v6 = vmul.f32 %v909_v61, %v1593_v32 }
  0x34   : > { %v579_v4 = vadd.f32 %v547_v57, %v479_v52  ;;  %v877_v7 = vadd.f32 %v845_v29, %v777_v58  ;;  %v878_v8 = vadd.f32 %v846_v49, %v778_v59  ;;  %v747_v9 = vmul.f32 %v1664_v21, %v1629_v53  ;;  %v1743_v49 = vld [vmem:[#allocation2 + $0x87] sm:$0xff] }
  0x35   : > { %v448_v12 = vmul.f32 %v1648_v0, %v1605_v39  ;;  %v1077_v13 = vadd.f32 %v1045_v20, %v977_v3  ;;  %v847_v16 = vmul.f32 %v1669_v25, %v1632_v54  ;;  %v948_v61 = vmul.f32 %v1635_v55, %v1700_v2  ;;  %v1758_v57 = vld [vmem:[#allocation2 + $0x88] sm:$0xff] }
  0x36   : > { %v679_v14 = vadd.f32 %v647_v5, %v579_v4  ;;  %v978_v18 = vadd.f32 %v946_v30, %v877_v7  ;;  %v979_v19 = vadd.f32 %v947_v51, %v878_v8  ;;  %v548_v24 = vmul.f32 %v1650_v1, %v1608_v40  ;;  %v1770_v8 = vld [vmem:[#allocation2 + $0x89] sm:$0xff] }
  0x37   : > { %v480_v23 = vadd.f32 %v448_v12, %v348_v6  ;;  %v1177_v0 = vadd.f32 %v1145_v22, %v1077_v13  ;;  %v1048_v26 = vmul.f32 %v1645_v62, %v1707_v10  ;;  %v1148_v27 = vmul.f32 %v1640_v56, %v1709_v11  ;;  %v1774_v13 = vld [vmem:[#allocation2 + $0x8f] sm:$0xff] }
  0x38   : > { %v779_v20 = vadd.f32 %v747_v9, %v679_v14  ;;  %v1078_v29 = vadd.f32 %v1046_v33, %v978_v18  ;;  %v1079_v30 = vadd.f32 %v1047_v60, %v979_v19  ;;  %v648_v1 = vmul.f32 %v1679_v36, %v1623_v48  ;;  %v1776_v14 = vld [vmem:[#allocation2 + $0x90] sm:$0xff] }
  0x39   : > { %v580_v31 = vadd.f32 %v548_v24, %v480_v23  ;;  %v1216_v22 = vmul.f32 %v1720_v17, %v1177_v0  ;;  %v349_v35 = vmul.f32 %v1658_v15, %v1593_v32  ;;  %v449_v37 = vmul.f32 %v1664_v21, %v1605_v39 }
  0x3a   : > { %v879_v34 = vadd.f32 %v847_v16, %v779_v20  ;;  %v1178_v43 = vadd.f32 %v1146_v38, %v1078_v29  ;;  %v1179_v44 = vadd.f32 %v1147_v63, %v1079_v30  ;;  %v748_v33 = vmul.f32 %v1683_v41, %v1629_v53  ;;  %v1783_v20 = vld [vmem:[#allocation2 + $0x91] sm:$0xff] }
  0x3b   : > { %v680_v45 = vadd.f32 %v648_v1, %v580_v31  ;;  %v1255_v46 = vadd.f32 %v1731_v28, %v1216_v22  ;;  %v481_v50 = vadd.f32 %v449_v37, %v349_v35  ;;  %v549_v51 = vmul.f32 %v1669_v25, %v1608_v40 }
  0x3c   : > { %v980_v47 = vadd.f32 %v948_v61, %v879_v34  ;;  %v1217_v15 = vmul.f32 %v1720_v17, %v1178_v43  ;;  %v1218_v21 = vmul.f32 %v1720_v17, %v1179_v44  ;;  %v848_v52 = vmul.f32 %v1685_v42, %v1632_v54  ;;  %v1800_v34 = vld [vmem:[#allocation2 + $0xa7] sm:$0xff] }
  0x3d   : > { %v780_v38 = vadd.f32 %v748_v33, %v680_v45  ;;  %v1287_v58 = vmax.f32 %v1255_v46, 0.0  ;;  %v581_v25 = vadd.f32 %v549_v51, %v481_v50  ;;  %v649_v60 = vmul.f32 %v1700_v2, %v1623_v48  ;;  %v1810_v50 = vld [vmem:[#allocation2 + $0xa9] sm:$0xff] }
  0x3e   : > { %v1080_v59 = vadd.f32 %v1048_v26, %v980_v47  ;;  %v1256_v63 = vadd.f32 %v1731_v28, %v1217_v15  ;;  %v1257_v3 = vadd.f32 %v1731_v28, %v1218_v21  ;;  %v949_v5 = vmul.f32 %v1635_v55, %v1743_v49  ;;  %v1808_v47 = vld [vmem:[#allocation2 + $0xa8] sm:$0xff] }
  0x3f   : > { %v880_v4 = vadd.f32 %v848_v52, %v780_v38  ;;  %1319 = vst.msk [vmem:[%s1752_s6] sm:$0xff] %vm198_vm0, %v1287_v58  ;;  %v1049_v7 = vmul.f32 %v1645_v62, %v1758_v57  ;;  %v681_v9 = vadd.f32 %v649_v60, %v581_v25  ;;  %v749_v12 = vmul.f32 %v1707_v10, %v1629_v53 }
  0x40   : > { %v1180_v6 = vadd.f32 %v1148_v27, %v1080_v59  ;;  %v1288_v16 = vmax.f32 %v1256_v63, 0.0  ;;  %v1289_v61 = vmax.f32 %v1257_v3, 0.0  ;;  %v350_v19 = vmul.f32 %v1679_v36, %v1593_v32  ;;  %v1832_v3 = vld [vmem:[#allocation2 + $0xaf] sm:$0xff] }
  0x41   : > { %v981_v18 = vadd.f32 %v949_v5, %v880_v4  ;;  %v781_v24 = vadd.f32 %v749_v12, %v681_v9  ;;  %v849_v0 = vmul.f32 %v1709_v11, %v1632_v54  ;;  %v450_v26 = vmul.f32 %v1683_v41, %v1605_v39 }
  0x42   : > { %v1219_v23 = vmul.f32 %v1720_v17, %v1180_v6  ;;  %1320 = vst.msk [vmem:[%s1752_s6 + $0x8] sm:$0xff] %vm198_vm0, %v1288_v16  ;;  %1321 = vst.msk [vmem:[%s1752_s6 + $0x10] sm:$0xff] %vm198_vm0, %v1289_v61  ;;  %v1149_v29 = vmul.f32 %v1640_v56, %v1770_v8  ;;  %v950_v36 = vmul.f32 %v1635_v55, %v1774_v13 }
  0x43   : > { %v1081_v27 = vadd.f32 %v1049_v7, %v981_v18  ;;  %v1050_v30 = vmul.f32 %v1645_v62, %v1776_v14  ;;  %v881_v1 = vadd.f32 %v849_v0, %v781_v24  ;;  %v482_v22 = vadd.f32 %v450_v26, %v350_v19  ;;  %v1834_v7 = vld [vmem:[#allocation2 + $0xb0] sm:$0xff] }
  0x44   : > { %v1258_v31 = vadd.f32 %v1731_v28, %v1219_v23  ;;  %v550_v41 = vmul.f32 %v1685_v42, %v1608_v40  ;;  %v1150_v37 = vmul.f32 %v1640_v56, %v1783_v20  ;;  %v650_v43 = vmul.f32 %v1743_v49, %v1623_v48 }
  0x45   : > { %v1181_v35 = vadd.f32 %v1149_v29, %v1081_v27  ;;  %v351_v44 = vmul.f32 %v1700_v2, %v1593_v32  ;;  %v982_v33 = vadd.f32 %v950_v36, %v881_v1  ;;  %v451_v42 = vmul.f32 %v1707_v10, %v1605_v39  ;;  %v1860_v1 = vld [vmem:[#allocation2 + $0xc7] sm:$0xff] }
  0x46   : > { %v1290_v45 = vmax.f32 %v1258_v31, 0.0  ;;  %v582_v46 = vadd.f32 %v550_v41, %v482_v22  ;;  %v750_v15 = vmul.f32 %v1758_v57, %v1629_v53  ;;  %v850_v21 = vmul.f32 %v1770_v8, %v1632_v54 }
  0x47   : > { %v1220_v51 = vmul.f32 %v1720_v17, %v1181_v35  ;;  %v951_v2 = vmul.f32 %v1635_v55, %v1800_v34  ;;  %v1082_v38 = vadd.f32 %v1050_v30, %v982_v33  ;;  %v483_v58 = vadd.f32 %v451_v42, %v351_v44  ;;  %v1864_v35 = vld [vmem:[#allocation2 + $0xc8] sm:$0xff] }
  0x48   : > { %1322 = vst.msk [vmem:[%s1752_s6 + $0x18] sm:$0xff] %vm198_vm0, %v1290_v45  ;;  %v682_v52 = vadd.f32 %v650_v43, %v582_v46  ;;  %v551_v59 = vmul.f32 %v1709_v11, %v1608_v40  ;;  %v1051_v25 = vmul.f32 %v1645_v62, %v1808_v47  ;;  %v1151_v60 = vmul.f32 %v1640_v56, %v1810_v50  ;;  %v1836_v11 = vld [vmem:[#allocation2 + $0xb1] sm:$0xff] }
  0x49   : > { %v1259_v10 = vadd.f32 %v1731_v28, %v1220_v51  ;;  %v651_v63 = vmul.f32 %v1774_v13, %v1623_v48  ;;  %v1182_v4 = vadd.f32 %v1150_v37, %v1082_v38  ;;  %v352_v9 = vmul.f32 %v1743_v49, %v1593_v32  ;;  %v1866_v37 = vld [vmem:[#allocation2 + $0xc9] sm:$0xff] }
  0x4a   : > { %v782_v5 = vadd.f32 %v750_v15, %v682_v52  ;;  %v583_v6 = vadd.f32 %v551_v59, %v483_v58  ;;  %v751_v16 = vmul.f32 %v1776_v14, %v1629_v53  ;;  %v851_v61 = vmul.f32 %v1783_v20, %v1632_v54  ;;  %v1884_v52 = vld [vmem:[#allocation2 + $0xcf] sm:$0xff] }
  0x4b   : > { %v1291_v12 = vmax.f32 %v1259_v10, 0.0  ;;  %v452_v18 = vmul.f32 %v1758_v57, %v1605_v39  ;;  %v1221_v19 = vmul.f32 %v1720_v17, %v1182_v4  ;;  %v952_v0 = vmul.f32 %v1635_v55, %v1832_v3  ;;  %v1893_v4 = vld [vmem:[#allocation2 + $0xd0] sm:$0xff] }
  0x4c   : > { %v882_v23 = vadd.f32 %v850_v21, %v782_v5  ;;  %v683_v24 = vadd.f32 %v651_v63, %v583_v6  ;;  %v1052_v49 = vmul.f32 %v1645_v62, %v1834_v7  ;;  %v1152_v26 = vmul.f32 %v1640_v56, %v1836_v11  ;;  %v1895_v5 = vld [vmem:[#allocation2 + $0xd1] sm:$0xff] }
  0x4d   : > { %1323 = vst.msk [vmem:[%s1752_s6 + $0x20] sm:$0xff] %vm198_vm0, %v1291_v12  ;;  %v484_v27 = vadd.f32 %v452_v18, %v352_v9  ;;  %v552_v29 = vmul.f32 %v1770_v8, %v1608_v40  ;;  %v1260_v57 = vadd.f32 %v1731_v28, %v1221_v19  ;;  %v652_v31 = vmul.f32 %v1800_v34, %v1623_v48 }
  0x4e   : > { %v983_v36 = vadd.f32 %v951_v2, %v882_v23  ;;  %v783_v30 = vadd.f32 %v751_v16, %v683_v24  ;;  %v752_v41 = vmul.f32 %v1808_v47, %v1629_v53  ;;  %v353_v8 = vmul.f32 %v1774_v13, %v1593_v32 }
  0x4f   : > { %v584_v22 = vadd.f32 %v552_v29, %v484_v27  ;;  %v453_v43 = vmul.f32 %v1776_v14, %v1605_v39  ;;  %v1292_v44 = vmax.f32 %v1260_v57, 0.0  ;;  %v852_v46 = vmul.f32 %v1810_v50, %v1632_v54 }
  0x50   : > { %v1083_v45 = vadd.f32 %v1051_v25, %v983_v36  ;;  %v883_v33 = vadd.f32 %v851_v61, %v783_v30  ;;  %v953_v51 = vmul.f32 %v1635_v55, %v1860_v1  ;;  %v553_v21 = vmul.f32 %v1783_v20, %v1608_v40 }
  0x51   : > { %v684_v42 = vadd.f32 %v652_v31, %v584_v22  ;;  %v485_v15 = vadd.f32 %v453_v43, %v353_v8  ;;  %1324 = vst.msk [vmem:[%s1752_s6 + $0x28] sm:$0xff] %vm198_vm0, %v1292_v44  ;;  %v1053_v14 = vmul.f32 %v1645_v62, %v1864_v35  ;;  %v1153_v38 = vmul.f32 %v1640_v56, %v1866_v37  ;;  %v1913_v31 = vld [vmem:[#allocation2 + $0xe7] sm:$0xff] }
  0x52   : > { %v1183_v13 = vadd.f32 %v1151_v60, %v1083_v45  ;;  %v984_v2 = vadd.f32 %v952_v0, %v883_v33  ;;  %v653_v10 = vmul.f32 %v1832_v3, %v1623_v48  ;;  %v354_v20 = vmul.f32 %v1800_v34, %v1593_v32 }
  0x53   : > { %v784_v58 = vadd.f32 %v752_v41, %v684_v42  ;;  %v585_v59 = vadd.f32 %v553_v21, %v485_v15  ;;  %v753_v63 = vmul.f32 %v1834_v7, %v1629_v53  ;;  %v454_v6 = vmul.f32 %v1808_v47, %v1605_v39  ;;  %v1928_v42 = vld [vmem:[#allocation2 + $0xe9] sm:$0xff] }
  0x54   : > { %v1222_v25 = vmul.f32 %v1720_v17, %v1183_v13  ;;  %v1084_v60 = vadd.f32 %v1052_v49, %v984_v2  ;;  %v853_v16 = vmul.f32 %v1836_v11, %v1632_v54  ;;  %v954_v34 = vmul.f32 %v1635_v55, %v1884_v52 }
  0x55   : > { %v884_v9 = vadd.f32 %v852_v46, %v784_v58  ;;  %v685_v12 = vadd.f32 %v653_v10, %v585_v59  ;;  %v486_v19 = vadd.f32 %v454_v6, %v354_v20  ;;  %v554_v23 = vmul.f32 %v1810_v50, %v1608_v40  ;;  %v1915_v50 = vld [vmem:[#allocation2 + $0xe8] sm:$0xff] }
  0x56   : > { %v1261_v61 = vadd.f32 %v1731_v28, %v1222_v25  ;;  %v1184_v18 = vadd.f32 %v1152_v26, %v1084_v60  ;;  %v1054_v47 = vmul.f32 %v1645_v62, %v1893_v4  ;;  %v1154_v49 = vmul.f32 %v1640_v56, %v1895_v5  ;;  %v1943_v10 = vld [vmem:[#allocation2 + $0xef] sm:$0xff] }
  0x57   : > { %v985_v24 = vadd.f32 %v953_v51, %v884_v9  ;;  %v785_v0 = vadd.f32 %v753_v63, %v685_v12  ;;  %v586_v57 = vadd.f32 %v554_v23, %v486_v19  ;;  %v654_v26 = vmul.f32 %v1860_v1, %v1623_v48  ;;  %v1952_v12 = vld [vmem:[#allocation2 + $0xf0] sm:$0xff] }
  0x58   : > { %v1293_v27 = vmax.f32 %v1261_v61, 0.0  ;;  %v1223_v29 = vmul.f32 %v1720_v17, %v1184_v18  ;;  %v355_v22 = vmul.f32 %v1832_v3, %v1593_v32  ;;  %v455_v41 = vmul.f32 %v1834_v7, %v1605_v39  ;;  %v1956_v61 = vld [vmem:[#allocation2 + $0xf1] sm:$0xff] }
  0x59   : > { %v1085_v36 = vadd.f32 %v1053_v14, %v985_v24  ;;  %v885_v30 = vadd.f32 %v853_v16, %v785_v0  ;;  %v686_v43 = vadd.f32 %v654_v26, %v586_v57  ;;  %v754_v44 = vmul.f32 %v1864_v35, %v1629_v53 }
  0x5a   : > { %1325 = vst.msk [vmem:[%s1752_s6 + $0x30] sm:$0xff] %vm198_vm0, %v1293_v27  ;;  %v1262_v8 = vadd.f32 %v1731_v28, %v1223_v29  ;;  %v854_v45 = vmul.f32 %v1866_v37, %v1632_v54  ;;  %v487_v3 = vadd.f32 %v455_v41, %v355_v22  ;;  %v555_v7 = vmul.f32 %v1836_v11, %v1608_v40  ;;  %v1967_v29 = vld [vmem:[#allocation2 + $0x107] sm:$0xff] }
  0x5b   : > { %v1185_v33 = vadd.f32 %v1153_v38, %v1085_v36  ;;  %v986_v46 = vadd.f32 %v954_v34, %v885_v30  ;;  %v786_v15 = vadd.f32 %v754_v44, %v686_v43  ;;  %v955_v21 = vmul.f32 %v1635_v55, %v1913_v31  ;;  %v1980_v43 = vld [vmem:[#allocation2 + $0x109] sm:$0xff] }
  0x5c   : > { %v1294_v51 = vmax.f32 %v1262_v8, 0.0  ;;  %v1055_v13 = vmul.f32 %v1645_v62, %v1915_v50  ;;  %v587_v58 = vadd.f32 %v555_v7, %v487_v3  ;;  %v655_v38 = vmul.f32 %v1884_v52, %v1623_v48  ;;  %v1978_v8 = vld [vmem:[#allocation2 + $0x108] sm:$0xff] }
  0x5d   : > { %v1224_v2 = vmul.f32 %v1720_v17, %v1185_v33  ;;  %v1086_v14 = vadd.f32 %v1054_v47, %v986_v46  ;;  %v886_v59 = vadd.f32 %v854_v45, %v786_v15  ;;  %v1155_v11 = vmul.f32 %v1640_v56, %v1928_v42 }
  0x5e   : > { %1326 = vst.msk [vmem:[%s1752_s6 + $0x38] sm:$0xff] %vm198_vm0, %v1294_v51  ;;  %v356_v20 = vmul.f32 %v1860_v1, %v1593_v32  ;;  %v456_v25 = vmul.f32 %v1864_v35, %v1605_v39  ;;  %v687_v6 = vadd.f32 %v655_v38, %v587_v58  ;;  %v755_v9 = vmul.f32 %v1893_v4, %v1629_v53 }
  0x5f   : > { %v1263_v60 = vadd.f32 %v1731_v28, %v1224_v2  ;;  %v1186_v63 = vadd.f32 %v1154_v49, %v1086_v14  ;;  %v987_v16 = vadd.f32 %v955_v21, %v886_v59  ;;  %v855_v34 = vmul.f32 %v1895_v5, %v1632_v54  ;;  %v1999_v14 = vld [vmem:[#allocation2 + $0x10f] sm:$0xff] }
  0x60   : > { %v488_v1 = vadd.f32 %v456_v25, %v356_v20  ;;  %v556_v35 = vmul.f32 %v1866_v37, %v1608_v40  ;;  %v787_v23 = vadd.f32 %v755_v9, %v687_v6  ;;  %v956_v24 = vmul.f32 %v1635_v55, %v1943_v10 }
  0x61   : > { %v1295_v18 = vmax.f32 %v1263_v60, 0.0  ;;  %v1225_v19 = vmul.f32 %v1720_v17, %v1186_v63  ;;  %v1087_v0 = vadd.f32 %v1055_v13, %v987_v16  ;;  %v1056_v47 = vmul.f32 %v1645_v62, %v1952_v12  ;;  %v2010_v63 = vld [vmem:[#allocation2 + $0x111] sm:$0xff] }
  0x62   : > { %v588_v49 = vadd.f32 %v556_v35, %v488_v1  ;;  %v656_v27 = vmul.f32 %v1913_v31, %v1623_v48  ;;  %v887_v57 = vadd.f32 %v855_v34, %v787_v23  ;;  %v1156_v26 = vmul.f32 %v1640_v56, %v1956_v61 }
  0x63   : > { %1327 = vst.msk [vmem:[%s1752_s6 + $0x40] sm:$0xff] %vm198_vm0, %v1295_v18  ;;  %v1264_v37 = vadd.f32 %v1731_v28, %v1225_v19  ;;  %v357_v36 = vmul.f32 %v1884_v52, %v1593_v32  ;;  %v1187_v30 = vadd.f32 %v1155_v11, %v1087_v0  ;;  %v756_v41 = vmul.f32 %v1915_v50, %v1629_v53 }
  0x64   : > { %v688_v22 = vadd.f32 %v656_v27, %v588_v49  ;;  %v457_v44 = vmul.f32 %v1893_v4, %v1605_v39  ;;  %v988_v33 = vadd.f32 %v956_v24, %v887_v57  ;;  %v856_v46 = vmul.f32 %v1928_v42, %v1632_v54  ;;  %v2028_v27 = vld [vmem:[#allocation2 + $0x127] sm:$0xff] }
  0x65   : > { %v1296_v45 = vmax.f32 %v1264_v37, 0.0  ;;  %v957_v52 = vmul.f32 %v1635_v55, %v1967_v29  ;;  %v1226_v3 = vmul.f32 %v1720_v17, %v1187_v30  ;;  %v557_v15 = vmul.f32 %v1895_v5, %v1608_v40  ;;  %v2002_v5 = vld [vmem:[#allocation2 + $0x110] sm:$0xff]  ;;  %v2030_v37 = vld [vmem:[#allocation2 + $0x128] sm:$0xff] }
  0x66   : > { %v788_v7 = vadd.f32 %v756_v41, %v688_v22  ;;  %v489_v51 = vadd.f32 %v457_v44, %v357_v36  ;;  %v1088_v21 = vadd.f32 %v1056_v47, %v988_v33  ;;  %v1057_v4 = vmul.f32 %v1645_v62, %v1978_v8  ;;  %v2040_v41 = vld [vmem:[#allocation2 + $0x129] sm:$0xff] }
  0x67   : > { %1328 = vst.msk [vmem:[%s1752_s6 + $0x48] sm:$0xff] %vm198_vm0, %v1296_v45  ;;  %v1157_v13 = vmul.f32 %v1640_v56, %v1980_v43  ;;  %v657_v2 = vmul.f32 %v1943_v10, %v1623_v48  ;;  %v1265_v58 = vadd.f32 %v1731_v28, %v1226_v3  ;;  %v358_v11 = vmul.f32 %v1913_v31, %v1593_v32 }
  0x68   : > { %v888_v38 = vadd.f32 %v856_v46, %v788_v7  ;;  %v589_v59 = vadd.f32 %v557_v15, %v489_v51  ;;  %v1188_v20 = vadd.f32 %v1156_v26, %v1088_v21  ;;  %v757_v25 = vmul.f32 %v1952_v12, %v1629_v53 }
  0x69   : > { %v857_v60 = vmul.f32 %v1956_v61, %v1632_v54  ;;  %v458_v6 = vmul.f32 %v1915_v50, %v1605_v39  ;;  %v1297_v9 = vmax.f32 %v1265_v58, 0.0  ;;  %v958_v1 = vmul.f32 %v1635_v55, %v1999_v14 }
  0x6a   : > { %v989_v16 = vadd.f32 %v957_v52, %v888_v38  ;;  %v689_v34 = vadd.f32 %v657_v2, %v589_v59  ;;  %v1227_v31 = vmul.f32 %v1720_v17, %v1188_v20  ;;  %v1058_v35 = vmul.f32 %v1645_v62, %v2002_v5  ;;  %v2058_v2 = vld [vmem:[#allocation2 + $0x130] sm:$0xff] }
  0x6b   : > { %v490_v18 = vadd.f32 %v458_v6, %v358_v11  ;;  %v558_v19 = vmul.f32 %v1928_v42, %v1608_v40  ;;  %1329 = vst.msk [vmem:[%s1752_s6 + $0x50] sm:$0xff] %vm198_vm0, %v1297_v9  ;;  %v1158_v50 = vmul.f32 %v1640_v56, %v2010_v63  ;;  %v658_v0 = vmul.f32 %v1967_v29, %v1623_v48 }
  0x6c   : > { %v1089_v23 = vadd.f32 %v1057_v4, %v989_v16  ;;  %v789_v24 = vadd.f32 %v757_v25, %v689_v34  ;;  %v1266_v47 = vadd.f32 %v1731_v28, %v1227_v31  ;;  %v359_v42 = vmul.f32 %v1943_v10, %v1593_v32 }
  0x6d   : > { %v590_v49 = vadd.f32 %v558_v19, %v490_v18  ;;  %v459_v57 = vmul.f32 %v1952_v12, %v1605_v39  ;;  %v758_v30 = vmul.f32 %v1978_v8, %v1629_v53  ;;  %v858_v22 = vmul.f32 %v1980_v43, %v1632_v54 }
  0x6e   : > { %v1189_v26 = vadd.f32 %v1157_v13, %v1089_v23  ;;  %v889_v36 = vadd.f32 %v857_v60, %v789_v24  ;;  %v1298_v44 = vmax.f32 %v1266_v47, 0.0  ;;  %v559_v46 = vmul.f32 %v1956_v61, %v1608_v40  ;;  %v2056_v13 = vld [vmem:[#allocation2 + $0x12f] sm:$0xff] }
  0x6f   : > { %v690_v45 = vadd.f32 %v658_v0, %v590_v49  ;;  %v491_v33 = vadd.f32 %v459_v57, %v359_v42  ;;  %v959_v12 = vmul.f32 %v1635_v55, %v2028_v27  ;;  %v1059_v3 = vmul.f32 %v1645_v62, %v2030_v37  ;;  %v2068_v60 = vld [vmem:[#allocation2 + $0x131] sm:$0xff]  ;;  %v2085_v0 = vld [vmem:[#allocation2 + $0x148] sm:$0xff] }
  0x70   : > { %v1228_v10 = vmul.f32 %v1720_v17, %v1189_v26  ;;  %v990_v52 = vadd.f32 %v958_v1, %v889_v36  ;;  %1330 = vst.msk [vmem:[%s1752_s6 + $0x58] sm:$0xff] %vm198_vm0, %v1298_v44  ;;  %v1159_v51 = vmul.f32 %v1640_v56, %v2040_v41  ;;  %v659_v21 = vmul.f32 %v1999_v14, %v1623_v48  ;;  %v2096_v44 = vld [vmem:[#allocation2 + $0x149] sm:$0xff] }
  0x71   : > { %v790_v7 = vadd.f32 %v758_v30, %v690_v45  ;;  %v591_v15 = vadd.f32 %v559_v46, %v491_v33  ;;  %v360_v58 = vmul.f32 %v1967_v29, %v1593_v32  ;;  %v460_v38 = vmul.f32 %v1978_v8, %v1605_v39 }
  0x72   : > { %v1267_v61 = vadd.f32 %v1731_v28, %v1228_v10  ;;  %v1090_v4 = vadd.f32 %v1058_v35, %v990_v52  ;;  %v759_v20 = vmul.f32 %v2002_v5, %v1629_v53  ;;  %v859_v25 = vmul.f32 %v2010_v63, %v1632_v54 }
  0x73   : > { %v890_v59 = vadd.f32 %v858_v22, %v790_v7  ;;  %v691_v11 = vadd.f32 %v659_v21, %v591_v15  ;;  %v492_v16 = vadd.f32 %v460_v38, %v360_v58  ;;  %v560_v34 = vmul.f32 %v1980_v43, %v1608_v40  ;;  %v2111_v15 = vld [vmem:[#allocation2 + $0x14f] sm:$0xff] }
  0x74   : > { %v1299_v6 = vmax.f32 %v1267_v61, 0.0  ;;  %v1190_v9 = vadd.f32 %v1158_v50, %v1090_v4  ;;  %v960_v8 = vmul.f32 %v1635_v55, %v2056_v13  ;;  %v1060_v31 = vmul.f32 %v1645_v62, %v2058_v2  ;;  %v2083_v50 = vld [vmem:[#allocation2 + $0x147] sm:$0xff] }
  0x75   : > { %v991_v29 = vadd.f32 %v959_v12, %v890_v59  ;;  %v791_v1 = vadd.f32 %v759_v20, %v691_v11  ;;  %v1160_v18 = vmul.f32 %v1640_v56, %v2068_v60  ;;  %v592_v19 = vadd.f32 %v560_v34, %v492_v16  ;;  %v2120_v11 = vld [vmem:[#allocation2 + $0x150] sm:$0xff] }
  0x76   : > { %1331 = vst.msk [vmem:[%s1752_s6 + $0x60] sm:$0xff] %vm198_vm0, %v1299_v6  ;;  %v1229_v35 = vmul.f32 %v1720_v17, %v1190_v9  ;;  %v660_v23 = vmul.f32 %v2028_v27, %v1623_v48  ;;  %v361_v47 = vmul.f32 %v1999_v14, %v1593_v32  ;;  %v461_v49 = vmul.f32 %v2002_v5, %v1605_v39  ;;  %v2124_v6 = vld [vmem:[#allocation2 + $0x151] sm:$0xff] }
  0x77   : > { %v1091_v43 = vadd.f32 %v1059_v3, %v991_v29  ;;  %v891_v24 = vadd.f32 %v859_v25, %v791_v1  ;;  %v760_v26 = vmul.f32 %v2030_v37, %v1629_v53  ;;  %v860_v36 = vmul.f32 %v2040_v41, %v1632_v54 }
  0x78   : > { %v1268_v42 = vadd.f32 %v1731_v28, %v1229_v35  ;;  %v692_v57 = vadd.f32 %v660_v23, %v592_v19  ;;  %v493_v45 = vadd.f32 %v461_v49, %v361_v47  ;;  %v561_v14 = vmul.f32 %v2010_v63, %v1608_v40 }
  0x79   : > { %v1191_v30 = vadd.f32 %v1159_v51, %v1091_v43  ;;  %v992_v22 = vadd.f32 %v960_v8, %v891_v24  ;;  %v961_v46 = vmul.f32 %v1635_v55, %v2083_v50  ;;  %v1061_v10 = vmul.f32 %v1645_v62, %v2085_v0 }
  0x7a   : > { %v1300_v33 = vmax.f32 %v1268_v42, 0.0  ;;  %v792_v5 = vadd.f32 %v760_v26, %v692_v57  ;;  %v593_v3 = vadd.f32 %v561_v14, %v493_v45  ;;  %v661_v7 = vmul.f32 %v2056_v13, %v1623_v48  ;;  %v2146_v42 = vld [vmem:[#allocation2 + $0x168] sm:$0xff] }
  0x7b   : > { %v1230_v52 = vmul.f32 %v1720_v17, %v1191_v30  ;;  %v1092_v12 = vadd.f32 %v1060_v31, %v992_v22  ;;  %v1161_v63 = vmul.f32 %v1640_v56, %v2096_v44  ;;  %v362_v21 = vmul.f32 %v2028_v27, %v1593_v32  ;;  %v2148_v57 = vld [vmem:[#allocation2 + $0x169] sm:$0xff] }
  0x7c   : > { %1332 = vst.msk [vmem:[%s1752_s6 + $0x68] sm:$0xff] %vm198_vm0, %v1300_v33  ;;  %v892_v51 = vadd.f32 %v860_v36, %v792_v5  ;;  %v462_v61 = vmul.f32 %v2030_v37, %v1605_v39  ;;  %v693_v38 = vadd.f32 %v661_v7, %v593_v3  ;;  %v761_v59 = vmul.f32 %v2058_v2, %v1629_v53 }
  0x7d   : > { %v1269_v4 = vadd.f32 %v1731_v28, %v1230_v52  ;;  %v1192_v58 = vadd.f32 %v1160_v18, %v1092_v12  ;;  %v861_v25 = vmul.f32 %v2068_v60, %v1632_v54  ;;  %v562_v37 = vmul.f32 %v2040_v41, %v1608_v40  ;;  %v2135_v18 = vld [vmem:[#allocation2 + $0x167] sm:$0xff]  ;;  %v2167_v12 = vld [vmem:[#allocation2 + $0x16f] sm:$0xff] }
  0x7e   : > { %v993_v20 = vadd.f32 %v961_v46, %v892_v51  ;;  %v494_v27 = vadd.f32 %v462_v61, %v362_v21  ;;  %v793_v34 = vadd.f32 %v761_v59, %v693_v38  ;;  %v962_v29 = vmul.f32 %v1635_v55, %v2111_v15 }
  0x7f   : > { %v1301_v9 = vmax.f32 %v1269_v4, 0.0  ;;  %v1231_v16 = vmul.f32 %v1720_v17, %v1192_v58  ;;  %v1062_v8 = vmul.f32 %v1645_v62, %v2120_v11  ;;  %v662_v35 = vmul.f32 %v2083_v50, %v1623_v48  ;;  %v2178_v58 = vld [vmem:[#allocation2 + $0x171] sm:$0xff] }
  0x80   : > { %v1093_v1 = vadd.f32 %v1061_v10, %v993_v20  ;;  %v594_v31 = vadd.f32 %v562_v37, %v494_v27  ;;  %v893_v19 = vadd.f32 %v861_v25, %v793_v34  ;;  %v1162_v23 = vmul.f32 %v1640_v56, %v2124_v6 }
  0x81   : > { %1333 = vst.msk [vmem:[%s1752_s6 + $0x70] sm:$0xff] %vm198_vm0, %v1301_v9  ;;  %v1270_v41 = vadd.f32 %v1731_v28, %v1231_v16  ;;  %v363_v43 = vmul.f32 %v2056_v13, %v1593_v32  ;;  %v762_v49 = vmul.f32 %v2085_v0, %v1629_v53  ;;  %v463_v26 = vmul.f32 %v2058_v2, %v1605_v39 }
  0x82   : > { %v1193_v24 = vadd.f32 %v1161_v63, %v1093_v1  ;;  %v694_v47 = vadd.f32 %v662_v35, %v594_v31  ;;  %v994_v30 = vadd.f32 %v962_v29, %v893_v19  ;;  %v862_v22 = vmul.f32 %v2096_v44, %v1632_v54  ;;  %v2196_v35 = vld [vmem:[#allocation2 + $0x187] sm:$0xff] }
  0x83   : > { %v1302_v36 = vmax.f32 %v1270_v41, 0.0  ;;  %v963_v13 = vmul.f32 %v1635_v55, %v2135_v18  ;;  %v495_v33 = vadd.f32 %v463_v26, %v363_v43  ;;  %v563_v5 = vmul.f32 %v2068_v60, %v1608_v40  ;;  %v2170_v60 = vld [vmem:[#allocation2 + $0x170] sm:$0xff]  ;;  %v2198_v41 = vld [vmem:[#allocation2 + $0x188] sm:$0xff] }
  0x84   : > { %v1232_v45 = vmul.f32 %v1720_v17, %v1193_v24  ;;  %v794_v14 = vadd.f32 %v762_v49, %v694_v47  ;;  %v1094_v46 = vadd.f32 %v1062_v8, %v994_v30  ;;  %v1063_v2 = vmul.f32 %v1645_v62, %v2146_v42  ;;  %v2208_v49 = vld [vmem:[#allocation2 + $0x189] sm:$0xff] }
  0x85   : > { %1334 = vst.msk [vmem:[%s1752_s6 + $0x78] sm:$0xff] %vm198_vm0, %v1302_v36  ;;  %v1163_v10 = vmul.f32 %v1640_v56, %v2148_v57  ;;  %v663_v52 = vmul.f32 %v2111_v15, %v1623_v48  ;;  %v595_v51 = vadd.f32 %v563_v5, %v495_v33  ;;  %v364_v63 = vmul.f32 %v2083_v50, %v1593_v32 }
  0x86   : > { %v1271_v3 = vadd.f32 %v1731_v28, %v1232_v45  ;;  %v894_v7 = vadd.f32 %v862_v22, %v794_v14  ;;  %v1194_v21 = vadd.f32 %v1162_v23, %v1094_v46  ;;  %v763_v61 = vmul.f32 %v2120_v11, %v1629_v53 }
  0x87   : > { %v863_v4 = vmul.f32 %v2124_v6, %v1632_v54  ;;  %v464_v38 = vmul.f32 %v2085_v0, %v1605_v39  ;;  %v695_v25 = vadd.f32 %v663_v52, %v595_v51  ;;  %v964_v27 = vmul.f32 %v1635_v55, %v2167_v12  ;;  %v2226_v52 = vld [vmem:[#allocation2 + $0x190] sm:$0xff] }
  0x88   : > { %v1303_v59 = vmax.f32 %v1271_v3, 0.0  ;;  %v995_v20 = vadd.f32 %v963_v13, %v894_v7  ;;  %v1233_v50 = vmul.f32 %v1720_v17, %v1194_v21  ;;  %v1064_v37 = vmul.f32 %v1645_v62, %v2170_v60 }
  0x89   : > { %v496_v9 = vadd.f32 %v464_v38, %v364_v63  ;;  %v564_v16 = vmul.f32 %v2096_v44, %v1608_v40  ;;  %v795_v29 = vadd.f32 %v763_v61, %v695_v25  ;;  %v1164_v0 = vmul.f32 %v1640_v56, %v2178_v58  ;;  %v2236_v61 = vld [vmem:[#allocation2 + $0x191] sm:$0xff] }
  0x8a   : > { %1335 = vst.msk [vmem:[%s1752_s6 + $0x80] sm:$0xff] %vm198_vm0, %v1303_v59  ;;  %v1095_v34 = vadd.f32 %v1063_v2, %v995_v20  ;;  %v664_v1 = vmul.f32 %v2135_v18, %v1623_v48  ;;  %v1272_v8 = vadd.f32 %v1731_v28, %v1233_v50  ;;  %v365_v44 = vmul.f32 %v2111_v15, %v1593_v32 }
  0x8b   : > { %v596_v31 = vadd.f32 %v564_v16, %v496_v9  ;;  %v465_v19 = vmul.f32 %v2120_v11, %v1605_v39  ;;  %v895_v43 = vadd.f32 %v863_v4, %v795_v29  ;;  %v764_v24 = vmul.f32 %v2146_v42, %v1629_v53 }
  0x8c   : > { %v1195_v23 = vadd.f32 %v1163_v10, %v1095_v34  ;;  %v864_v47 = vmul.f32 %v2148_v57, %v1632_v54  ;;  %v1304_v26 = vmax.f32 %v1272_v8, 0.0  ;;  %v565_v22 = vmul.f32 %v2124_v6, %v1608_v40  ;;  %v2224_v10 = vld [vmem:[#allocation2 + $0x18f] sm:$0xff] }
  0x8d   : > { %v696_v36 = vadd.f32 %v664_v1, %v596_v31  ;;  %v497_v30 = vadd.f32 %v465_v19, %v365_v44  ;;  %v996_v13 = vadd.f32 %v964_v27, %v895_v43  ;;  %v965_v11 = vmul.f32 %v1635_v55, %v2196_v35  ;;  %v2258_v1 = vld [vmem:[#allocation2 + $0x1a8] sm:$0xff] }
  0x8e   : > { %v1234_v15 = vmul.f32 %v1720_v17, %v1195_v23  ;;  %v1065_v45 = vmul.f32 %v1645_v62, %v2198_v41  ;;  %1336 = vst.msk [vmem:[%s1752_s6 + $0x88] sm:$0xff] %vm198_vm0, %v1304_v26  ;;  %v1165_v33 = vmul.f32 %v1640_v56, %v2208_v49  ;;  %v665_v46 = vmul.f32 %v2167_v12, %v1623_v48  ;;  %v2269_v26 = vld [vmem:[#allocation2 + $0x1a9] sm:$0xff] }
  0x8f   : > { %v796_v14 = vadd.f32 %v764_v24, %v696_v36  ;;  %v597_v5 = vadd.f32 %v565_v22, %v497_v30  ;;  %v1096_v2 = vadd.f32 %v1064_v37, %v996_v13  ;;  %v366_v3 = vmul.f32 %v2135_v18, %v1593_v32  ;;  %v2250_v37 = vld [vmem:[%s2511_s1 + $0x8] ss:$0 sm:$0xff] }
  0x90   : > { %v1273_v6 = vadd.f32 %v1731_v28, %v1234_v15  ;;  %v466_v7 = vmul.f32 %v2146_v42, %v1605_v39  ;;  %v765_v63 = vmul.f32 %v2170_v60, %v1629_v53  ;;  %v865_v21 = vmul.f32 %v2178_v58, %v1632_v54 }
  0x91   : > { %v896_v51 = vadd.f32 %v864_v47, %v796_v14  ;;  %v697_v56 = vadd.f32 %v665_v46, %v597_v5  ;;  %v1196_v38 = vadd.f32 %v1164_v0, %v1096_v2  ;;  %v566_v20 = vmul.f32 %v2148_v57, %v1608_v40  ;;  %v2256_v0 = vld [vmem:[#allocation2 + $0x1a7] sm:$0xff]  ;;  %v2284_v5 = vld [vmem:[#allocation2 + $0x1af] sm:$0xff] }
  0x92   : > { %v1305_v4 = vmax.f32 %v1273_v6, 0.0  ;;  %v498_v59 = vadd.f32 %v466_v7, %v366_v3  ;;  %v966_v42 = vmul.f32 %v1635_v55, %v2224_v10  ;;  %v1066_v27 = vmul.f32 %v1645_v62, %v2226_v52 }
  0x93   : > { %v997_v18 = vadd.f32 %v965_v11, %v896_v51  ;;  %v797_v25 = vadd.f32 %v765_v63, %v697_v56  ;;  %v1235_v50 = vmul.f32 %v1720_v17, %v1196_v38  ;;  %v1166_v57 = vmul.f32 %v2250_v37, %v2236_v61  ;;  %v2293_v56 = vld [vmem:[#allocation2 + $0x1b0] sm:$0xff] }
  0x94   : > { %1337 = vst.msk [vmem:[%s1752_s6 + $0x90] sm:$0xff] %vm198_vm0, %v1305_v4  ;;  %v598_v9 = vadd.f32 %v566_v20, %v498_v59  ;;  %v666_v16 = vmul.f32 %v2196_v35, %v1623_v48  ;;  %v367_v8 = vmul.f32 %v2167_v12, %v1593_v32  ;;  %v467_v31 = vmul.f32 %v2170_v60, %v1605_v39  ;;  %v2297_v4 = vld [vmem:[#allocation2 + $0x1b1] sm:$0xff] }
  0x95   : > { %v1097_v34 = vadd.f32 %v1065_v45, %v997_v18  ;;  %v897_v29 = vadd.f32 %v865_v21, %v797_v25  ;;  %v1274_v44 = vadd.f32 %v1731_v28, %v1235_v50  ;;  %v766_v23 = vmul.f32 %v2198_v41, %v1629_v53 }
  0x96   : > { %v698_v19 = vadd.f32 %v666_v16, %v598_v9  ;;  %v866_v43 = vmul.f32 %v2208_v49, %v1632_v54  ;;  %v499_v36 = vadd.f32 %v467_v31, %v367_v8  ;;  %v567_v12 = vmul.f32 %v2178_v58, %v1608_v40  ;;  %v2319_v31 = vld [vmem:[#allocation2 + $0x1c8] sm:$0xff] }
  0x97   : > { %v1197_v24 = vadd.f32 %v1165_v33, %v1097_v34  ;;  %v998_v47 = vadd.f32 %v966_v42, %v897_v29  ;;  %v1306_v30 = vmax.f32 %v1274_v44, 0.0  ;;  %v967_v22 = vmul.f32 %v1635_v55, %v2256_v0  ;;  %v2321_v44 = vld [vmem:[#allocation2 + $0x1c9] sm:$0xff] }
  0x98   : > { %v798_v60 = vadd.f32 %v766_v23, %v698_v19  ;;  %v1067_v15 = vmul.f32 %v1645_v62, %v2258_v1  ;;  %v599_v45 = vadd.f32 %v567_v12, %v499_v36  ;;  %v667_v14 = vmul.f32 %v2224_v10, %v1623_v48 }
  0x99   : > { %v1236_v13 = vmul.f32 %v1720_v17, %v1197_v24  ;;  %v1098_v11 = vadd.f32 %v1066_v27, %v998_v47  ;;  %1338 = vst.msk [vmem:[%s1752_s6 + $0x98] sm:$0xff] %vm198_vm0, %v1306_v30  ;;  %v1167_v58 = vmul.f32 %v2250_v37, %v2269_v26  ;;  %v368_v46 = vmul.f32 %v2196_v35, %v1593_v32  ;;  %v2332_v24 = vld [vmem:[%s2512_s2] ss:$0 sm:$0xff] }
  0x9a   : > { %v898_v33 = vadd.f32 %v866_v43, %v798_v60  ;;  %v468_v6 = vmul.f32 %v2198_v41, %v1605_v39  ;;  %v699_v7 = vadd.f32 %v667_v14, %v599_v45  ;;  %v767_v51 = vmul.f32 %v2226_v52, %v1629_v53 }
  0x9b   : > { %v1275_v2 = vadd.f32 %v1731_v28, %v1236_v13  ;;  %v1198_v3 = vadd.f32 %v1166_v57, %v1098_v11  ;;  %v867_v21 = vmul.f32 %v2236_v61, %v1632_v54  ;;  %v568_v41 = vmul.f32 %v2208_v49, %v1608_v40  ;;  %v2308_v57 = vld [vmem:[#allocation2 + $0x1c7] sm:$0xff]  ;;  %v2345_v13 = vld [vmem:[#allocation2 + $0x1cf] sm:$0xff]  ;;  %v2350_v11 = vld [vmem:[%s2513_s3] ss:$0 sm:$0xff] }
  0x9c   : > { %v999_v63 = vadd.f32 %v967_v22, %v898_v33  ;;  %v500_v35 = vadd.f32 %v468_v6, %v368_v46  ;;  %v799_v20 = vadd.f32 %v767_v51, %v699_v7  ;;  %v968_v18 = vmul.f32 %v1635_v55, %v2284_v5  ;;  %v2353_v33 = vld [vmem:[#allocation2 + $0x1d0] sm:$0xff] }
  0x9d   : > { %v1307_v38 = vmax.f32 %v1275_v2, 0.0  ;;  %v1237_v59 = vmul.f32 %v1720_v17, %v1198_v3  ;;  %v1068_v42 = vmul.f32 %v1645_v62, %v2293_v56  ;;  %v668_v50 = vmul.f32 %v2256_v0, %v1623_v48  ;;  %v2361_v3 = vld [vmem:[#allocation2 + $0x1d1] sm:$0xff] }
  0x9e   : > { %v1099_v25 = vadd.f32 %v1067_v15, %v999_v63  ;;  %v600_v27 = vadd.f32 %v568_v41, %v500_v35  ;;  %v899_v9 = vadd.f32 %v867_v21, %v799_v20  ;;  %v1168_v17 = vmul.f32 %v2250_v37, %v2297_v4 }
  0x9f   : > { %1339 = vst.msk [vmem:[%s1752_s6 + $0xa0] sm:$0xff] %vm198_vm0, %v1307_v38  ;;  %v1276_v49 = vadd.f32 %v1731_v28, %v1237_v59  ;;  %v369_v16 = vmul.f32 %v2224_v10, %v1593_v32  ;;  %v768_v8 = vmul.f32 %v2258_v1, %v1629_v53  ;;  %v469_v28 = vmul.f32 %v2226_v52, %v1605_v39 }
  0xa0   : > { %v1199_v34 = vadd.f32 %v1167_v58, %v1099_v25  ;;  %v700_v29 = vadd.f32 %v668_v50, %v600_v27  ;;  %v1000_v23 = vadd.f32 %v968_v18, %v899_v9  ;;  %v868_v43 = vmul.f32 %v2269_v26, %v1632_v54  ;;  %v2379_v50 = vld [vmem:[#allocation2 + $0x1e7] sm:$0xff] }
  0xa1   : > { %v1308_v19 = vmax.f32 %v1276_v49, 0.0  ;;  %v969_v10 = vmul.f32 %v1635_v55, %v2308_v57  ;;  %v501_v12 = vadd.f32 %v469_v28, %v369_v16  ;;  %v569_v52 = vmul.f32 %v2236_v61, %v1608_v40  ;;  %v2381_v49 = vld [vmem:[#allocation2 + $0x1e8] sm:$0xff] }
  0xa2   : > { %v1238_v47 = vmul.f32 %v2332_v24, %v1199_v34  ;;  %v800_v36 = vadd.f32 %v768_v8, %v700_v29  ;;  %v1100_v30 = vadd.f32 %v1068_v42, %v1000_v23  ;;  %v1069_v60 = vmul.f32 %v1645_v62, %v2319_v31  ;;  %v2391_v8 = vld [vmem:[#allocation2 + $0x1e9] sm:$0xff] }
  0xa3   : > { %1340 = vst.msk [vmem:[%s1752_s6 + $0xa8] sm:$0xff] %vm198_vm0, %v1308_v19  ;;  %v1169_v22 = vmul.f32 %v2250_v37, %v2321_v44  ;;  %v669_v15 = vmul.f32 %v2284_v5, %v1623_v48  ;;  %v601_v14 = vadd.f32 %v569_v52, %v501_v12  ;;  %v370_v58 = vmul.f32 %v2256_v0, %v1593_v32 }
  0xa4   : > { %v1277_v61 = vadd.f32 %v2350_v11, %v1238_v47  ;;  %v900_v45 = vadd.f32 %v868_v43, %v800_v36  ;;  %v1200_v46 = vadd.f32 %v1168_v17, %v1100_v30  ;;  %v769_v6 = vmul.f32 %v2293_v56, %v1629_v53 }
  0xa5   : > { %v869_v2 = vmul.f32 %v2297_v4, %v1632_v54  ;;  %v470_v7 = vmul.f32 %v2258_v1, %v1605_v39  ;;  %v701_v21 = vadd.f32 %v669_v15, %v601_v14  ;;  %v970_v35 = vmul.f32 %v1635_v55, %v2345_v13  ;;  %v2409_v15 = vld [vmem:[#allocation2 + $0x1f0] sm:$0xff] }
  0xa6   : > { %v1309_v51 = vmax.f32 %v1277_v61, 0.0  ;;  %v1001_v63 = vadd.f32 %v969_v10, %v900_v45  ;;  %v1239_v0 = vmul.f32 %v2332_v24, %v1200_v46  ;;  %v1070_v41 = vmul.f32 %v1645_v62, %v2353_v33 }
  0xa7   : > { %v502_v38 = vadd.f32 %v470_v7, %v370_v58  ;;  %v570_v59 = vmul.f32 %v2269_v26, %v1608_v40  ;;  %v801_v18 = vadd.f32 %v769_v6, %v701_v21  ;;  %v1170_v1 = vmul.f32 %v2250_v37, %v2361_v3 }
  0xa8   : > { %1341 = vst.msk [vmem:[%s1752_s6 + $0xb0] sm:$0xff] %vm198_vm0, %v1309_v51  ;;  %v1101_v20 = vadd.f32 %v1069_v60, %v1001_v63  ;;  %v670_v25 = vmul.f32 %v2308_v57, %v1623_v48  ;;  %v1278_v42 = vadd.f32 %v2350_v11, %v1239_v0  ;;  %v371_v26 = vmul.f32 %v2284_v5, %v1593_v32 }
  0xa9   : > { %v602_v27 = vadd.f32 %v570_v59, %v502_v38  ;;  %v471_v9 = vmul.f32 %v2293_v56, %v1605_v39  ;;  %v901_v16 = vadd.f32 %v869_v2, %v801_v18  ;;  %v770_v34 = vmul.f32 %v2319_v31, %v1629_v53  ;;  %v2419_v2 = vld [vmem:[#allocation2 + $0x1f1] sm:$0xff] }
  0xaa   : > { %v1201_v17 = vadd.f32 %v1169_v22, %v1101_v20  ;;  %v870_v29 = vmul.f32 %v2321_v44, %v1632_v54  ;;  %v1310_v28 = vmax.f32 %v1278_v42, 0.0  ;;  %v571_v43 = vmul.f32 %v2297_v4, %v1608_v40  ;;  %v2407_v22 = vld [vmem:[#allocation2 + $0x1ef] sm:$0xff] }
  0xab   : > { %v702_v19 = vadd.f32 %v670_v25, %v602_v27  ;;  %v503_v23 = vadd.f32 %v471_v9, %v371_v26  ;;  %v1002_v10 = vadd.f32 %v970_v35, %v901_v16  ;;  %v971_v56 = vmul.f32 %v1635_v55, %v2379_v50  ;;  %v1037_v25 = vld [vmem:[#allocation2 + $0x208] sm:$0xff] }
  0xac   : > { %v1240_v5 = vmul.f32 %v2332_v24, %v1201_v17  ;;  %v1071_v47 = vmul.f32 %v1645_v62, %v2381_v49  ;;  %1342 = vst.msk [vmem:[%s1752_s6 + $0xb8] sm:$0xff] %vm198_vm0, %v1310_v28  ;;  %v1171_v12 = vmul.f32 %v2250_v37, %v2391_v8  ;;  %v671_v30 = vmul.f32 %v2345_v13, %v1623_v48  ;;  %v1137_v28 = vld [vmem:[#allocation2 + $0x209] sm:$0xff] }
  0xad   : > { %v802_v36 = vadd.f32 %v770_v34, %v702_v19  ;;  %v603_v52 = vadd.f32 %v571_v43, %v503_v23  ;;  %v1102_v60 = vadd.f32 %v1070_v41, %v1002_v10  ;;  %v372_v61 = vmul.f32 %v2308_v57, %v1593_v32 }
  0xae   : > { %v1279_v4 = vadd.f32 %v2350_v11, %v1240_v5  ;;  %v472_v45 = vmul.f32 %v2319_v31, %v1605_v39  ;;  %v771_v46 = vmul.f32 %v2353_v33, %v1629_v53  ;;  %v871_v6 = vmul.f32 %v2361_v3, %v1632_v54 }
  0xaf   : > { %v902_v14 = vadd.f32 %v870_v29, %v802_v36  ;;  %v703_v58 = vadd.f32 %v671_v30, %v603_v52  ;;  %v1202_v51 = vadd.f32 %v1170_v1, %v1102_v60  ;;  %v572_v21 = vmul.f32 %v2321_v44, %v1608_v40  ;;  %v937_v1 = vld [vmem:[#allocation2 + $0x207] sm:$0xff] }
  0xb0   : > { %v1311_v7 = vmax.f32 %v1279_v4, 0.0  ;;  %v504_v63 = vadd.f32 %v472_v45, %v372_v61  ;;  %v972_v31 = vmul.f32 %v1635_v55, %v2407_v22  ;;  %v1072_v0 = vmul.f32 %v1645_v62, %v2409_v15 }
  0xb1   : > { %v1003_v57 = vadd.f32 %v971_v56, %v902_v14  ;;  %v803_v35 = vadd.f32 %v771_v46, %v703_v58  ;;  %v1241_v41 = vmul.f32 %v2332_v24, %v1202_v51  ;;  %v1172_v38 = vmul.f32 %v2250_v37, %v2419_v2  ;;  %v938_v14 = vld [vmem:[#allocation2 + $0x20f] sm:$0xff] }
  0xb2   : > { %1343 = vst.msk [vmem:[%s1752_s6 + $0xc0] sm:$0xff] %vm198_vm0, %v1311_v7  ;;  %v604_v59 = vadd.f32 %v572_v21, %v504_v63  ;;  %v672_v20 = vmul.f32 %v2379_v50, %v1623_v48  ;;  %v373_v42 = vmul.f32 %v2345_v13, %v1593_v32  ;;  %v473_v27 = vmul.f32 %v2353_v33, %v1605_v39  ;;  %v1038_v58 = vld [vmem:[#allocation2 + $0x210] sm:$0xff] }
  0xb3   : > { %v1103_v44 = vadd.f32 %v1071_v47, %v1003_v57  ;;  %v903_v18 = vadd.f32 %v871_v6, %v803_v35  ;;  %v1280_v26 = vadd.f32 %v2350_v11, %v1241_v41  ;;  %v772_v17 = vmul.f32 %v2381_v49, %v1629_v53  ;;  %v939_v41 = vld [vmem:[#allocation2 + $0x227] sm:$0xff] }
  0xb4   : > { %v704_v9 = vadd.f32 %v672_v20, %v604_v59  ;;  %v872_v16 = vmul.f32 %v2391_v8, %v1632_v54  ;;  %v505_v19 = vadd.f32 %v473_v27, %v373_v42  ;;  %v573_v13 = vmul.f32 %v2361_v3, %v1608_v40 }
  0xb5   : > { %v1203_v34 = vadd.f32 %v1171_v12, %v1103_v44  ;;  %v1004_v29 = vadd.f32 %v972_v31, %v903_v18  ;;  %v1312_v23 = vmax.f32 %v1280_v26, 0.0  ;;  %v973_v33 = vmul.f32 %v1635_v55, %v937_v1  ;;  %v1138_v18 = vld [vmem:[#allocation2 + $0x211] sm:$0xff] }
  0xb6   : > { %v804_v43 = vadd.f32 %v772_v17, %v704_v9  ;;  %v1073_v5 = vmul.f32 %v1645_v62, %v1037_v25  ;;  %v605_v47 = vadd.f32 %v573_v13, %v505_v19  ;;  %v673_v36 = vmul.f32 %v2407_v22, %v1623_v48  ;;  %v1139_v13 = vld [vmem:[#allocation2 + $0x229] sm:$0xff] }
  0xb7   : > { %v1242_v10 = vmul.f32 %v2332_v24, %v1203_v34  ;;  %v1104_v56 = vadd.f32 %v1072_v0, %v1004_v29  ;;  %1344 = vst.msk [vmem:[%s1752_s6 + $0xc8] sm:$0xff] %vm198_vm0, %v1312_v23  ;;  %v1173_v52 = vmul.f32 %v2250_v37, %v1137_v28  ;;  %v374_v3 = vmul.f32 %v2379_v50, %v1593_v32  ;;  %v1039_v29 = vld [vmem:[#allocation2 + $0x228] sm:$0xff] }
  0xb8   : > { %v904_v12 = vadd.f32 %v872_v16, %v804_v43  ;;  %v474_v30 = vmul.f32 %v2381_v49, %v1605_v39  ;;  %v705_v61 = vadd.f32 %v673_v36, %v605_v47  ;;  %v773_v45 = vmul.f32 %v2409_v15, %v1629_v53 }
  0xb9   : > { %v1281_v4 = vadd.f32 %v2350_v11, %v1242_v10  ;;  %v1204_v60 = vadd.f32 %v1172_v38, %v1104_v56  ;;  %v574_v7 = vmul.f32 %v2391_v8, %v1608_v40  ;;  %v674_v50 = vmul.f32 %v937_v1, %v1623_v48 }
  0xba   : > { %v1005_v46 = vadd.f32 %v973_v33, %v904_v12  ;;  %v506_v6 = vadd.f32 %v474_v30, %v374_v3  ;;  %v805_v63 = vadd.f32 %v773_v45, %v705_v61  ;;  %v873_v21 = vmul.f32 %v2419_v2, %v1632_v54  ;;  %v1140_v45 = vld [vmem:[#allocation2 + $0x231] sm:$0xff] }
  0xbb   : > { %v1313_v51 = vmax.f32 %v1281_v4, 0.0  ;;  %v1243_v49 = vmul.f32 %v2332_v24, %v1204_v60  ;;  %v974_v35 = vmul.f32 %v1635_v55, %v938_v14  ;;  %v1074_v31 = vmul.f32 %v1645_v62, %v1038_v58  ;;  %v1040_v4 = vld [vmem:[#allocation2 + $0x230] sm:$0xff] }
  0xbc   : > { %v1105_v57 = vadd.f32 %v1073_v5, %v1005_v46  ;;  %v606_v0 = vadd.f32 %v574_v7, %v506_v6  ;;  %v905_v38 = vadd.f32 %v873_v21, %v805_v63  ;;  %v774_v59 = vmul.f32 %v1037_v25, %v1629_v53 }
  0xbd   : > { %1345 = vst.msk [vmem:[%s1752_s6 + $0xd0] sm:$0xff] %vm198_vm0, %v1313_v51  ;;  %v1282_v8 = vadd.f32 %v2350_v11, %v1243_v49  ;;  %v375_v20 = vmul.f32 %v2407_v22, %v1593_v32  ;;  %v874_v42 = vmul.f32 %v1137_v28, %v1632_v54  ;;  %v475_v27 = vmul.f32 %v2409_v15, %v1605_v39 }
  0xbe   : > { %v1205_v44 = vadd.f32 %v1173_v52, %v1105_v57  ;;  %v706_v1 = vadd.f32 %v674_v50, %v606_v0  ;;  %v1006_v9 = vadd.f32 %v974_v35, %v905_v38  ;;  %v975_v17 = vmul.f32 %v1635_v55, %v939_v41 }
  0xbf   : > { %v1314_v26 = vmax.f32 %v1282_v8, 0.0  ;;  %v575_v16 = vmul.f32 %v2419_v2, %v1608_v40  ;;  %v507_v32 = vadd.f32 %v475_v27, %v375_v20  ;;  %v675_v22 = vmul.f32 %v938_v14, %v1623_v48  ;;  %v940_v2 = vld [vmem:[#allocation2 + $0x22f] sm:$0xff] }
  0xc0   : > { %v1244_v25 = vmul.f32 %v2332_v24, %v1205_v44  ;;  %v806_v34 = vadd.f32 %v774_v59, %v706_v1  ;;  %v1106_v28 = vadd.f32 %v1074_v31, %v1006_v9  ;;  %v1174_v39 = vmul.f32 %v2250_v37, %v1138_v18 }
  0xc1   : > { %1346 = vst.msk [vmem:[%s1752_s6 + $0xd8] sm:$0xff] %vm198_vm0, %v1314_v26  ;;  %v607_v23 = vadd.f32 %v575_v16, %v507_v32  ;;  %v1075_v40 = vmul.f32 %v1645_v62, %v1039_v29  ;;  %v775_v48 = vmul.f32 %v1038_v58, %v1629_v53  ;;  %v1175_v47 = vmul.f32 %v2250_v37, %v1139_v13 }
  0xc2   : > { %v1283_v15 = vadd.f32 %v2350_v11, %v1244_v25  ;;  %v906_v19 = vadd.f32 %v874_v42, %v806_v34  ;;  %v1206_v43 = vadd.f32 %v1174_v39, %v1106_v28  ;;  %v875_v52 = vmul.f32 %v1138_v18, %v1632_v54 }
  0xc3   : > { %v707_v10 = vadd.f32 %v675_v22, %v607_v23  ;;  %v976_v3 = vmul.f32 %v1635_v55, %v940_v2  ;;  %v1076_v46 = vmul.f32 %v1645_v62, %v1040_v4  ;;  %v1176_v55 = vmul.f32 %v2250_v37, %v1140_v45 }
  0xc4   : > { %v1315_v33 = vmax.f32 %v1283_v15, 0.0  ;;  %v1007_v5 = vadd.f32 %v975_v17, %v906_v19  ;;  %v1245_v56 = vmul.f32 %v2332_v24, %v1206_v43 }
  0xc5   : > { %v807_v12 = vadd.f32 %v775_v48, %v707_v10 }
  0xc6   : > { %1347 = vst.msk [vmem:[%s1752_s6 + $0xe0] sm:$0xff] %vm198_vm0, %v1315_v33  ;;  %v1107_v36 = vadd.f32 %v1075_v40, %v1007_v5  ;;  %v1284_v30 = vadd.f32 %v2350_v11, %v1245_v56 }
  0xc7   : > { %v907_v61 = vadd.f32 %v875_v52, %v807_v12 }
  0xc8   : > { %v1207_v60 = vadd.f32 %v1175_v47, %v1107_v36  ;;  %v1316_v53 = vmax.f32 %v1284_v30, 0.0 }
  0xc9   : > { %v1008_v58 = vadd.f32 %v976_v3, %v907_v61 }
  0xca   : > { %v1246_v14 = vmul.f32 %v2332_v24, %v1207_v60  ;;  %1348 = vst.msk [vmem:[%s1752_s6 + $0xe8] sm:$0xff] %vm198_vm0, %v1316_v53 }
  0xcb   : > { %v1108_v6 = vadd.f32 %v1076_v46, %v1008_v58 }
  0xcc   : > { %v1285_v54 = vadd.f32 %v2350_v11, %v1246_v14 }
  0xcd   : > { %v1208_v50 = vadd.f32 %v1176_v55, %v1108_v6 }
  0xce   : > { %v1317_v7 = vmax.f32 %v1285_v54, 0.0 }
  0xcf   : > { %v1247_v51 = vmul.f32 %v2332_v24, %v1208_v50 }
  0xd0   : > { %1349 = vst.msk [vmem:[%s1752_s6 + $0xf0] sm:$0xff] %vm198_vm0, %v1317_v7 }
  0xd1   : > { %v1286_v49 = vadd.f32 %v2350_v11, %v1247_v51 }
  0xd3   : > { %v1318_v63 = vmax.f32 %v1286_v49, 0.0 }
  0xd5   : > { %1350 = vst.msk [vmem:[%s1752_s6 + $0xf8] sm:$0xff] %vm198_vm0, %v1318_v63 }
  0xd6 PF: > { %s14_s15 = sadd.s32 1, %s1440_s15  }
  0xd7   : > { %p11_p4 = scmp.ge.s32.totalorder %s14_s15, 4  }
  0xd9   :  { %13 = sbr.rel (!%p11_p4) target bundleno = 1 (0x1), region = 69 }

</bundles_post_ra>
